<compile_context>
chip_gen: v6e
topology: v6e:2x2x1
jax: 0.10.0
libtpu: 0.0.40
codegen_flags: <defaults>
</compile_context>

<pallas_src>
import functools

import jax
import jax.numpy as jnp
import numpy as np
from jax import lax
from jax.experimental import pallas as pl
from jax.experimental.pallas import tpu as pltpu


# --------------------------------------------------------------------------- #
# Kernel                                                                      #
# --------------------------------------------------------------------------- #
def _phase_manipulation_kernel(flags_ref, x_ref, w_fwd_ref, w_inv_ref, scale_ref,
                               out_re_ref, out_im_ref, lhs_re_ref, lhs_im_ref,
                               *, tk):
    ki = pl.program_id(1)

    @pl.when(ki == 0)
    def _init():
        out_re_ref[...] = jnp.zeros_like(out_re_ref)
        out_im_ref[...] = jnp.zeros_like(out_im_ref)

    # Forward DFT of this frequency tile: ONE MXU dot with a 2*tk-wide result.
    # w_fwd columns are [cos | -sin] pre-scaled by 1/sqrt(L).
    rim = jnp.dot(x_ref[...], w_fwd_ref[...],
                  preferred_element_type=jnp.float32)            # (tb, 2*tk) f32
    re = rim[:, :tk]
    im = rim[:, tk:]

    @pl.when(flags_ref[ki] != 0)
    def _scaled_tile():
        # torch.angle / torch.abs / per-column phase scale / torch.polar.
        phase = jnp.arctan2(im, re) * scale_ref[...]             # (tb, tk)
        magnitude = jnp.sqrt(re * re + im * im)
        nr = (magnitude * jnp.cos(phase)).astype(jnp.bfloat16)
        ni = (magnitude * jnp.sin(phase)).astype(jnp.bfloat16)
        lhs_re_ref[:, :tk] = nr
        lhs_re_ref[:, tk:] = ni
        lhs_im_ref[:, :tk] = ni
        lhs_im_ref[:, tk:] = -nr

    @pl.when(flags_ref[ki] == 0)
    def _passthrough_tile():
        # No scaled column in this tile: polar(abs(z), angle(z)) == z, so the
        # EUP/VALU-heavy transcendental block is skipped entirely.
        nr = re.astype(jnp.bfloat16)
        ni = im.astype(jnp.bfloat16)
        lhs_re_ref[:, :tk] = nr
        lhs_re_ref[:, tk:] = ni
        lhs_im_ref[:, :tk] = ni
        lhs_im_ref[:, tk:] = -nr

    # Inverse-DFT contribution of this tile.  With w_inv rows [cos ; -sin]
    # (scaled by 1/sqrt(L)):
    #   out_re += new_re @ cos_rows + new_im @ (-sin_rows)
    #   out_im += new_im @ cos_rows - new_re @ (-sin_rows)
    # Both are plain (tb, 2*tk) x (2*tk, L) MXU dots; fwd*inv scaling = 1/L.
    out_re_ref[...] += jnp.dot(lhs_re_ref[...], w_inv_ref[...],
                               preferred_element_type=jnp.float32)
    out_im_ref[...] += jnp.dot(lhs_im_ref[...], w_inv_ref[...],
                               preferred_element_type=jnp.float32)


# --------------------------------------------------------------------------- #
# Host-side twiddle / tiling helpers                                          #
# --------------------------------------------------------------------------- #
@functools.lru_cache(maxsize=8)
def _dft_twiddles(L, tk):
    """bf16 DFT twiddle slabs, tile-contiguous, pre-scaled by 1/sqrt(L)."""
    n = np.arange(L, dtype=np.int64)
    nk = (n[:, None] * n[None, :]) % L                  # exact in int64
    ang = (2.0 * np.pi / L) * nk.astype(np.float64)
    s = 1.0 / np.sqrt(L)                                # fold ifft's 1/L, sqrt each side
    wr = np.cos(ang) * s                                # Re e^{-i ang}
    wi = -np.sin(ang) * s                               # Im e^{-i ang}
    nkt = L // tk
    # Forward operand: column layout, per-tile [wr_cols | wi_cols] -> (L, 2L).
    w_fwd = np.concatenate(
        [wr.reshape(L, nkt, tk), wi.reshape(L, nkt, tk)], axis=2).reshape(L, 2 * L)
    # Inverse operand: row layout, per-tile [wr_rows ; wi_rows] -> (2L, L).
    w_inv = np.concatenate(
        [wr.reshape(nkt, tk, L), wi.reshape(nkt, tk, L)], axis=1).reshape(2 * L, L)
    return (jnp.asarray(w_fwd, dtype=jnp.bfloat16),
            jnp.asarray(w_inv, dtype=jnp.bfloat16))


def _largest_divisor(dim, max_tile, step):
    t = (min(max_tile, dim) // step) * step
    while t >= step:
        if dim % t == 0:
            return t
        t -= step
    return None


def _vmem_usage_bytes(tb, tk, L):
    x_b = 2 * tb * L * 2                        # bf16 x tile, double-buffered
    w_b = 2 * (L * 2 * tk + 2 * tk * L) * 2     # bf16 twiddle tiles, double-buffered
    s_b = 2 * tk * 4                            # f32 scale tile
    o_b = 2 * 2 * tb * L * 4                    # two resident f32 outputs, dbl-buffered
    scr = 2 * tb * 2 * tk * 2                   # two bf16 lhs scratch buffers
    return x_b + w_b + s_b + o_b + scr


def _vmem_budget_bytes():
    try:
        cap = int(pltpu.get_tpu_info().vmem_capacity_bytes)
    except Exception:
        cap = 64 * 2 ** 20                      # conservative (v7x-sized) fallback
    # ~62% of physical, always leaving >= 24 MiB for compiler-internal scratch.
    return max(16 * 2 ** 20, min(cap - 24 * 2 ** 20, (5 * cap) // 8))


def _plan_tiles(B, L, budget):
    tk = _largest_divisor(L, min(512, L), 128) or L
    # Batch tile: multiple of 16 preferred (bf16 sublane packing), and <= B//2
    # whenever B >= 16 so the "parallel" axis has >= 2 blocks (lets the grid
    # shard across v7x's two TensorCores; cheap on single-TC parts).
    tb_cap = B // 2 if B >= 16 else B
    tb = (_largest_divisor(B, min(256, tb_cap), 16)
          or _largest_divisor(B, min(256, tb_cap), 8)
          or B)
    while _vmem_usage_bytes(tb, tk, L) > budget:
        new_tb = _largest_divisor(B, tb - 8, 8) if tb > 8 else None
        if new_tb is not None:
            tb = new_tb
            continue
        new_tk = _largest_divisor(L, tk - 128, 128) if tk > 128 else None
        if new_tk is not None:
            tk = new_tk
            continue
        break
    vmem_limit = int(min(budget,
                         max(32 * 2 ** 20, _vmem_usage_bytes(tb, tk, L) + (8 << 20))))
    return tb, tk, vmem_limit


# --------------------------------------------------------------------------- #
# Pallas wrapper                                                              #
# --------------------------------------------------------------------------- #
@functools.partial(jax.jit, static_argnames=("tb", "tk", "vmem_limit"))
def _phase_fft_pallas(flags, x_bf16, w_fwd, w_inv, scale, *, tb, tk, vmem_limit):
    B, L = x_bf16.shape
    nb, nkt = B // tb, L // tk
    kernel = functools.partial(_phase_manipulation_kernel, tk=tk)
    out_re, out_im = pl.pallas_call(
        kernel,
        grid_spec=pltpu.PrefetchScalarGridSpec(
            num_scalar_prefetch=1,
            grid=(nb, nkt),
            in_specs=[
                pl.BlockSpec((tb, L), lambda bi, ki, _f: (bi, 0)),        # x
                pl.BlockSpec((L, 2 * tk), lambda bi, ki, _f: (0, ki)),    # fwd twiddles
                pl.BlockSpec((2 * tk, L), lambda bi, ki, _f: (ki, 0)),    # inv twiddles
                pl.BlockSpec((1, tk), lambda bi, ki, _f: (0, ki)),        # column scale
            ],
            out_specs=(
                pl.BlockSpec((tb, L), lambda bi, ki, _f: (bi, 0)),
                pl.BlockSpec((tb, L), lambda bi, ki, _f: (bi, 0)),
            ),
            scratch_shapes=[
                pltpu.VMEM((tb, 2 * tk), jnp.bfloat16),   # lhs of the out_re dot
                pltpu.VMEM((tb, 2 * tk), jnp.bfloat16),   # lhs of the out_im dot
            ],
        ),
        out_shape=(
            jax.ShapeDtypeStruct((B, L), jnp.float32),
            jax.ShapeDtypeStruct((B, L), jnp.float32),
        ),
        compiler_params=pltpu.CompilerParams(
            dimension_semantics=("parallel", "arbitrary"),
            vmem_limit_bytes=vmem_limit,
        ),
    )(flags, x_bf16, w_fwd, w_inv, scale)
    return lax.complex(out_re, out_im)


def phase_manipulation_fft(x, col_scale):
    """fft -> multiply phase column-wise by `col_scale` -> ifft. Returns complex64."""
    B, L = x.shape
    tb, tk, vmem_limit = _plan_tiles(B, L, _vmem_budget_bytes())
    w_fwd, w_inv = _dft_twiddles(L, tk)
    scale = col_scale.reshape(1, L).astype(jnp.float32)
    # Per-frequency-tile flag: nonzero iff any column of the tile gets scaled.
    flags = jnp.any(scale.reshape(L // tk, tk) != 1.0, axis=1).astype(jnp.int32)
    return _phase_fft_pallas(flags, x.astype(jnp.bfloat16), w_fwd, w_inv, scale,
                             tb=tb, tk=tk, vmem_limit=vmem_limit)


class PhaseManipulation:
    """JAX/Pallas port of the torch PhaseManipulation module."""

    def __init__(self, probability: float = 1.0, gain: float = 0.0, features: int = 0):
        self.probability = probability
        self.gain = gain
        self.features = features

    def __call__(self, key, x):
        # Probability gate / feature pick / per-feature rand: host-side RNG glue
        # matching torch.rand / torch.randint.  NOTE: like the torch original,
        # the gate is a host decision (device sync, not jit-friendly) and the
        # output dtype is complex64 on the apply branch, x.dtype on skip.
        k_p, k_f, k_s = jax.random.split(key, 3)
        if not bool(self.probability > jax.random.uniform(k_p, ())):
            return x
        L = x.shape[-1]
        feat_idx = jax.random.randint(k_f, (self.features,), 0, L)
        feat_rand = jax.random.uniform(k_s, (self.features,))
        # Duplicate feature indices compound, exactly like repeated in-place
        # assignment in the torch reference (scatter-multiply applies all).
        col_scale = jnp.ones((L,), jnp.float32).at[feat_idx].multiply(
            self.gain * feat_rand)
        return phase_manipulation_fft(x, col_scale)


if __name__ == "__main__":
    B, L = 16, 256                    # small demo; B mult of 8, L mult of 128
    aug = PhaseManipulation(probability=1.0, gain=0.5, features=8)

    key = jax.random.PRNGKey(0)
    k_x, k_aug = jax.random.split(key)
    x = jax.random.normal(k_x, (B, L), dtype=jnp.float32)

    out = jax.block_until_ready(aug(k_aug, x))
    assert out.shape == (B, L)
    assert out.dtype == jnp.complex64
    assert bool(jnp.all(jnp.isfinite(out.real)) & jnp.all(jnp.isfinite(out.imag)))

    # Loose check against an fp32 jnp.fft reference (kernel uses bf16 x /
    # twiddles on the MXU with f32 accumulation).  Same RNG draws as __call__.
    k_p, k_f, k_s = jax.random.split(k_aug, 3)
    feat_idx = jax.random.randint(k_f, (aug.features,), 0, L)
    feat_rand = jax.random.uniform(k_s, (aug.features,))
    col_scale = jnp.ones((L,), jnp.float32).at[feat_idx].multiply(aug.gain * feat_rand)
    X = jnp.fft.fft(x.astype(jnp.complex64))
    phase = jnp.angle(X) * col_scale[None, :]
    mag = jnp.abs(X)
    ref = jnp.fft.ifft(lax.complex(mag * jnp.cos(phase), mag * jnp.sin(phase)))
    err = float(jnp.max(jnp.abs(out - ref)))
    assert err < 0.25, f"max abs err vs reference too large: {err}"

    # Identity config exercises the gated fast path (all tile flags == 0) with
    # the same compiled kernel: fft -> ifft should round-trip back to x.
    ident = PhaseManipulation(probability=1.0, gain=0.0, features=0)
    out_id = jax.block_until_ready(ident(k_aug, x))
    err_id = float(jnp.max(jnp.abs(out_id - x.astype(jnp.complex64))))
    assert err_id < 0.25, f"fft->ifft round-trip err too large: {err_id}"

    # TODO(synk): for very large L an O(L log L) multi-stage FFT (and/or pinning
    # the full twiddle slabs VMEM-resident with in-kernel dynamic slicing plus
    # rfft Hermitian symmetry) would be the next step; this kernel uses the
    # O(L^2) DFT-as-matmul formulation with streamed per-tile twiddles.
    print("KERNEL_OK")
</pallas_src>

<mosaic_0001>
module attributes {stable_mosaic.version = 11 : i64} {
  func.func @_phase_manipulation_kernel(%arg0: i32, %arg1: i32, %arg2: memref<1xi32, #tpu.memory_space<smem>>, %arg3: memref<8x256xbf16, #tpu.memory_space<vmem>>, %arg4: memref<256x512xbf16, #tpu.memory_space<vmem>>, %arg5: memref<512x256xbf16, #tpu.memory_space<vmem>>, %arg6: memref<1x256xf32, #tpu.memory_space<vmem>>, %arg7: memref<8x256xf32, #tpu.memory_space<vmem>>, %arg8: memref<8x256xf32, #tpu.memory_space<vmem>>, %arg9: memref<8x512xbf16, #tpu.memory_space<vmem>>, %arg10: memref<8x512xbf16, #tpu.memory_space<vmem>>) attributes {dimension_semantics = [#tpu.dimension_semantics<parallel>, #tpu.dimension_semantics<arbitrary>], iteration_bounds = array<i64: 2, 1>, scalar_prefetch = 1 : i64, scratch_operands = 2 : i64, tpu.core_type = #tpu.core_type<tc>, window_params = [{transform_indices = @transform_0, window_bounds = array<i64: 8, 256>}, {transform_indices = @transform_1, window_bounds = array<i64: 256, 512>}, {transform_indices = @transform_2, window_bounds = array<i64: 512, 256>}, {transform_indices = @transform_3, window_bounds = array<i64: 1, 256>}, {transform_indices = @transform_4, window_bounds = array<i64: 8, 256>}, {transform_indices = @transform_5, window_bounds = array<i64: 8, 256>}]} {
    %c0_i32 = arith.constant 0 : i32
    %0 = arith.cmpi eq, %arg1, %c0_i32 : i32
    %1 = arith.extui %0 : i1 to i32
    %c0_i32_0 = arith.constant 0 : i32
    %2 = arith.cmpi ne, %1, %c0_i32_0 : i32
    scf.if %2 {
      %cst_26 = arith.constant 0.000000e+00 : f32
      %30 = vector.broadcast %cst_26 : f32 to vector<8x256xf32>
      %c0_27 = arith.constant 0 : index
      %c0_28 = arith.constant 0 : index
      %31 = vector.load %arg7[%c0_27, %c0_28] : memref<8x256xf32, #tpu.memory_space<vmem>>, vector<8x256xf32>
      tpu.vector_store %arg7[%c0_27, %c0_28], %30 {strides = array<i32>} : memref<8x256xf32, #tpu.memory_space<vmem>>, vector<8x256xf32>,
      %cst_29 = arith.constant 0.000000e+00 : f32
      %32 = vector.broadcast %cst_29 : f32 to vector<8x256xf32>
      %c0_30 = arith.constant 0 : index
      %c0_31 = arith.constant 0 : index
      %33 = vector.load %arg8[%c0_30, %c0_31] : memref<8x256xf32, #tpu.memory_space<vmem>>, vector<8x256xf32>
      tpu.vector_store %arg8[%c0_30, %c0_31], %32 {strides = array<i32>} : memref<8x256xf32, #tpu.memory_space<vmem>>, vector<8x256xf32>,
    } else {
    }
    %c0 = arith.constant 0 : index
    %c0_1 = arith.constant 0 : index
    %3 = vector.load %arg3[%c0, %c0_1] : memref<8x256xbf16, #tpu.memory_space<vmem>>, vector<8x256xbf16>
    %c0_2 = arith.constant 0 : index
    %c0_3 = arith.constant 0 : index
    %4 = vector.load %arg4[%c0_2, %c0_3] : memref<256x512xbf16, #tpu.memory_space<vmem>>, vector<256x512xbf16>
    %cst = arith.constant dense<0.000000e+00> : vector<8x512xf32>
    %5 = tpu.matmul %3, %4, %cst {dimension_numbers = #tpu.dot_dimension_numbers<[1], [0], [0], [1], [0, 0, 1, 1], [], []>} : vector<8x256xbf16>, vector<256x512xbf16>, vector<8x512xf32> -> vector<8x512xf32>
    %6 = vector.extract_strided_slice %5 {offsets = [0, 0], sizes = [8, 256], strides = [1, 1]} : vector<8x512xf32> to vector<8x256xf32>
    %7 = vector.extract_strided_slice %5 {offsets = [0, 256], sizes = [8, 256], strides = [1, 1]} : vector<8x512xf32> to vector<8x256xf32>
    %8 = arith.index_cast %arg1 : i32 to index
    %9 = memref.load %arg2[%8] : memref<1xi32, #tpu.memory_space<smem>>
    %c0_i32_4 = arith.constant 0 : i32
    %10 = arith.cmpi ne, %9, %c0_i32_4 : i32
    %11 = arith.extui %10 : i1 to i32
    %c0_i32_5 = arith.constant 0 : i32
    %12 = arith.cmpi ne, %11, %c0_i32_5 : i32
    scf.if %12 {
      %30 = math.atan2 %7, %6 : vector<8x256xf32>
      %c0_26 = arith.constant 0 : index
      %c0_27 = arith.constant 0 : index
      %31 = vector.load %arg6[%c0_26, %c0_27] : memref<1x256xf32, #tpu.memory_space<vmem>>, vector<1x256xf32>
      %32 = vector.broadcast %31 : vector<1x256xf32> to vector<8x256xf32>
      %33 = arith.mulf %30, %32 : vector<8x256xf32>
      %34 = arith.mulf %6, %6 : vector<8x256xf32>
      %35 = arith.mulf %7, %7 : vector<8x256xf32>
      %36 = arith.addf %34, %35 : vector<8x256xf32>
      %37 = math.sqrt %36 : vector<8x256xf32>
      %38 = math.cos %33 : vector<8x256xf32>
      %39 = arith.mulf %37, %38 : vector<8x256xf32>
      %40 = arith.truncf %39 : vector<8x256xf32> to vector<8x256xbf16>
      %41 = math.sin %33 : vector<8x256xf32>
      %42 = arith.mulf %37, %41 : vector<8x256xf32>
      %43 = arith.truncf %42 : vector<8x256xf32> to vector<8x256xbf16>
      %c0_28 = arith.constant 0 : index
      %c0_29 = arith.constant 0 : index
      %44 = vector.load %arg9[%c0_28, %c0_29] : memref<8x512xbf16, #tpu.memory_space<vmem>>, vector<8x256xbf16>
      tpu.vector_store %arg9[%c0_28, %c0_29], %40 {strides = array<i32>} : memref<8x512xbf16, #tpu.memory_space<vmem>>, vector<8x256xbf16>,
      %c0_30 = arith.constant 0 : index
      %c256 = arith.constant 256 : index
      %45 = vector.load %arg9[%c0_30, %c256] : memref<8x512xbf16, #tpu.memory_space<vmem>>, vector<8x256xbf16>
      tpu.vector_store %arg9[%c0_30, %c256], %43 {strides = array<i32>} : memref<8x512xbf16, #tpu.memory_space<vmem>>, vector<8x256xbf16>,
      %c0_31 = arith.constant 0 : index
      %c0_32 = arith.constant 0 : index
      %46 = vector.load %arg10[%c0_31, %c0_32] : memref<8x512xbf16, #tpu.memory_space<vmem>>, vector<8x256xbf16>
      tpu.vector_store %arg10[%c0_31, %c0_32], %43 {strides = array<i32>} : memref<8x512xbf16, #tpu.memory_space<vmem>>, vector<8x256xbf16>,
      %cst_33 = arith.constant 0.000000e+00 : bf16
      %47 = vector.broadcast %cst_33 : bf16 to vector<8x256xbf16>
      %48 = arith.subf %47, %40 : vector<8x256xbf16>
      %c0_34 = arith.constant 0 : index
      %c256_35 = arith.constant 256 : index
      %49 = vector.load %arg10[%c0_34, %c256_35] : memref<8x512xbf16, #tpu.memory_space<vmem>>, vector<8x256xbf16>
      tpu.vector_store %arg10[%c0_34, %c256_35], %48 {strides = array<i32>} : memref<8x512xbf16, #tpu.memory_space<vmem>>, vector<8x256xbf16>,
    } else {
    }
    %13 = arith.index_cast %arg1 : i32 to index
    %14 = memref.load %arg2[%13] : memref<1xi32, #tpu.memory_space<smem>>
    %c0_i32_6 = arith.constant 0 : i32
    %15 = arith.cmpi eq, %14, %c0_i32_6 : i32
    %16 = arith.extui %15 : i1 to i32
    %c0_i32_7 = arith.constant 0 : i32
    %17 = arith.cmpi ne, %16, %c0_i32_7 : i32
    scf.if %17 {
      %30 = arith.truncf %6 : vector<8x256xf32> to vector<8x256xbf16>
      %31 = arith.truncf %7 : vector<8x256xf32> to vector<8x256xbf16>
      %c0_26 = arith.constant 0 : index
      %c0_27 = arith.constant 0 : index
      %32 = vector.load %arg9[%c0_26, %c0_27] : memref<8x512xbf16, #tpu.memory_space<vmem>>, vector<8x256xbf16>
      tpu.vector_store %arg9[%c0_26, %c0_27], %30 {strides = array<i32>} : memref<8x512xbf16, #tpu.memory_space<vmem>>, vector<8x256xbf16>,
      %c0_28 = arith.constant 0 : index
      %c256 = arith.constant 256 : index
      %33 = vector.load %arg9[%c0_28, %c256] : memref<8x512xbf16, #tpu.memory_space<vmem>>, vector<8x256xbf16>
      tpu.vector_store %arg9[%c0_28, %c256], %31 {strides = array<i32>} : memref<8x512xbf16, #tpu.memory_space<vmem>>, vector<8x256xbf16>,
      %c0_29 = arith.constant 0 : index
      %c0_30 = arith.constant 0 : index
      %34 = vector.load %arg10[%c0_29, %c0_30] : memref<8x512xbf16, #tpu.memory_space<vmem>>, vector<8x256xbf16>
      tpu.vector_store %arg10[%c0_29, %c0_30], %31 {strides = array<i32>} : memref<8x512xbf16, #tpu.memory_space<vmem>>, vector<8x256xbf16>,
      %cst_31 = arith.constant 0.000000e+00 : bf16
      %35 = vector.broadcast %cst_31 : bf16 to vector<8x256xbf16>
      %36 = arith.subf %35, %30 : vector<8x256xbf16>
      %c0_32 = arith.constant 0 : index
      %c256_33 = arith.constant 256 : index
      %37 = vector.load %arg10[%c0_32, %c256_33] : memref<8x512xbf16, #tpu.memory_space<vmem>>, vector<8x256xbf16>
      tpu.vector_store %arg10[%c0_32, %c256_33], %36 {strides = array<i32>} : memref<8x512xbf16, #tpu.memory_space<vmem>>, vector<8x256xbf16>,
    } else {
    }
    %c0_8 = arith.constant 0 : index
    %c0_9 = arith.constant 0 : index
    %18 = vector.load %arg7[%c0_8, %c0_9] : memref<8x256xf32, #tpu.memory_space<vmem>>, vector<8x256xf32>
    %c0_10 = arith.constant 0 : index
    %c0_11 = arith.constant 0 : index
    %19 = vector.load %arg9[%c0_10, %c0_11] : memref<8x512xbf16, #tpu.memory_space<vmem>>, vector<8x512xbf16>
    %c0_12 = arith.constant 0 : index
    %c0_13 = arith.constant 0 : index
    %20 = vector.load %arg5[%c0_12, %c0_13] : memref<512x256xbf16, #tpu.memory_space<vmem>>, vector<512x256xbf16>
    %cst_14 = arith.constant dense<0.000000e+00> : vector<8x256xf32>
    %21 = tpu.matmul %19, %20, %cst_14 {dimension_numbers = #tpu.dot_dimension_numbers<[1], [0], [0], [1], [0, 0, 1, 1], [], []>} : vector<8x512xbf16>, vector<512x256xbf16>, vector<8x256xf32> -> vector<8x256xf32>
    %22 = arith.addf %18, %21 : vector<8x256xf32>
    %c0_15 = arith.constant 0 : index
    %c0_16 = arith.constant 0 : index
    %23 = vector.load %arg7[%c0_15, %c0_16] : memref<8x256xf32, #tpu.memory_space<vmem>>, vector<8x256xf32>
    tpu.vector_store %arg7[%c0_15, %c0_16], %22 {strides = array<i32>} : memref<8x256xf32, #tpu.memory_space<vmem>>, vector<8x256xf32>,
    %c0_17 = arith.constant 0 : index
    %c0_18 = arith.constant 0 : index
    %24 = vector.load %arg8[%c0_17, %c0_18] : memref<8x256xf32, #tpu.memory_space<vmem>>, vector<8x256xf32>
    %c0_19 = arith.constant 0 : index
    %c0_20 = arith.constant 0 : index
    %25 = vector.load %arg10[%c0_19, %c0_20] : memref<8x512xbf16, #tpu.memory_space<vmem>>, vector<8x512xbf16>
    %c0_21 = arith.constant 0 : index
    %c0_22 = arith.constant 0 : index
    %26 = vector.load %arg5[%c0_21, %c0_22] : memref<512x256xbf16, #tpu.memory_space<vmem>>, vector<512x256xbf16>
    %cst_23 = arith.constant dense<0.000000e+00> : vector<8x256xf32>
    %27 = tpu.matmul %25, %26, %cst_23 {dimension_numbers = #tpu.dot_dimension_numbers<[1], [0], [0], [1], [0, 0, 1, 1], [], []>} : vector<8x512xbf16>, vector<512x256xbf16>, vector<8x256xf32> -> vector<8x256xf32>
    %28 = arith.addf %24, %27 : vector<8x256xf32>
    %c0_24 = arith.constant 0 : index
    %c0_25 = arith.constant 0 : index
    %29 = vector.load %arg8[%c0_24, %c0_25] : memref<8x256xf32, #tpu.memory_space<vmem>>, vector<8x256xf32>
    tpu.vector_store %arg8[%c0_24, %c0_25], %28 {strides = array<i32>} : memref<8x256xf32, #tpu.memory_space<vmem>>, vector<8x256xf32>,
    return
  }
  func.func @transform_0(%arg0: i32, %arg1: i32, %arg2: memref<1xi32, #tpu.memory_space<smem>>) -> (i32, i32) {
    %c0_i32 = arith.constant 0 : i32
    %c0_i32_0 = arith.constant 0 : i32
    return %arg0, %c0_i32 : i32, i32
  }
  func.func @transform_1(%arg0: i32, %arg1: i32, %arg2: memref<1xi32, #tpu.memory_space<smem>>) -> (i32, i32) {
    %c0_i32 = arith.constant 0 : i32
    %c0_i32_0 = arith.constant 0 : i32
    return %c0_i32, %arg1 : i32, i32
  }
  func.func @transform_2(%arg0: i32, %arg1: i32, %arg2: memref<1xi32, #tpu.memory_space<smem>>) -> (i32, i32) {
    %c0_i32 = arith.constant 0 : i32
    %c0_i32_0 = arith.constant 0 : i32
    return %arg1, %c0_i32 : i32, i32
  }
  func.func @transform_3(%arg0: i32, %arg1: i32, %arg2: memref<1xi32, #tpu.memory_space<smem>>) -> (i32, i32) {
    %c0_i32 = arith.constant 0 : i32
    %c0_i32_0 = arith.constant 0 : i32
    return %c0_i32, %arg1 : i32, i32
  }
  func.func @transform_4(%arg0: i32, %arg1: i32, %arg2: memref<1xi32, #tpu.memory_space<smem>>) -> (i32, i32) {
    %c0_i32 = arith.constant 0 : i32
    %c0_i32_0 = arith.constant 0 : i32
    return %arg0, %c0_i32 : i32, i32
  }
  func.func @transform_5(%arg0: i32, %arg1: i32, %arg2: memref<1xi32, #tpu.memory_space<smem>>) -> (i32, i32) {
    %c0_i32 = arith.constant 0 : i32
    %c0_i32_0 = arith.constant 0 : i32
    return %arg0, %c0_i32 : i32, i32
  }
}

</mosaic_0001>

<bundles_post_ra>
// kernel: custom-call
= control target key start
LH: loop header
LB: loop body
LE: loop exit
PB: predicated region body
PF: predicated region fallthrough
CT: control target
= control target key end

     0   :  { %s92_s0 = inlined_call_operand.vmem [shape: f32[16,256], index: 0, kind: input, shape index: {}]   ;;  %s93_s1 = inlined_call_operand.vmem [shape: f32[16,256], index: 1, kind: input, shape index: {}]   ;;  %s94_s2 = inlined_call_operand.hbm [shape: c64[16,256], index: 2, kind: output, shape index: {}]  }
   0x1   :  { %s3_s11 = scalar_lea.hbm %s94_s2, 512 }
   0x2   :  { %4 = vsyncpa [#allocation0], 0  ;;  %s5_s14 = sshll.u32 %s92_s0, 4  ;;  %s6_s14 = int_to_ptr.vmem [resolvable:$true] %s5_s14 }
   0x3   :  { %s18_s15 = scalar_lea.vmem %s6_s14, 512  ;;  %p23_p1 = scmp.lt.s32.totalorder %s6_s14, %s6_s14 }
   0x4   :  { %p19_p0 = scmp.ne.s32.totalorder %s6_s14, %s18_s15  ;;  %p24_p2 = scmp.lt.s32.totalorder %s18_s15, %s18_s15 }
   0x6   :  { %p25_p3 = por %p24_p2, %p23_p1 }
   0x8   :  { %p26_p4 = pnand %p25_p3, %p19_p0 }
   0xa   :  { %29 = shalt.err (!%p26_p4)  }
   0xb   :  { %8 = dma.vmem_to_hbm [thread:$0]  %s6_s14, 512, %s94_s2, [#allocation0] }
   0xc   :  { %61 = dma.done.wait [#allocation0], 512  }
   0xd   :  { %62 = vsyncadd [#allocation0], 4294966784 }
   0xe   :  { %10 = vsyncpa [#allocation0], 1 }
   0xf   :  { %11 = vsyncpa [#allocation1], 0  ;;  %s12_s0 = sshll.u32 %s93_s1, 4  ;;  %s13_s0 = int_to_ptr.vmem [resolvable:$true] %s12_s0 }
  0x10   :  { %s38_s20 = scalar_lea.vmem %s13_s0, 512  ;;  %p43_p6 = scmp.lt.s32.totalorder %s13_s0, %s13_s0 }
  0x11   :  { %p39_p5 = scmp.ne.s32.totalorder %s13_s0, %s38_s20  ;;  %p44_p7 = scmp.lt.s32.totalorder %s38_s20, %s38_s20 }
  0x13   :  { %p45_p8 = por %p44_p7, %p43_p6 }
  0x15   :  { %p46_p9 = pnand %p45_p8, %p39_p5 }
  0x17   :  { %49 = shalt.err (!%p46_p9)  }
  0x18   :  { %15 = dma.vmem_to_hbm [thread:$0]  %s13_s0, 512, %s3_s11, [#allocation1] }
  0x19   :  { %63 = dma.done.wait [#allocation1], 512  }
  0x1a   :  { %64 = vsyncadd [#allocation1], 4294966784 }
  0x1b   :  { %17 = vsyncpa [#allocation1], 1 }

// kernel: _phase_fft_pallas.1
= control target key start
LH: loop header
LB: loop body
LE: loop exit
PB: predicated region body
PF: predicated region fallthrough
CT: control target
= control target key end

     0   :  { %s3938_s0 = inlined_call_operand.<no memory space> [shape: s32[1], index: 0, kind: input, shape index: {}]   ;;  %s3939_s1 = inlined_call_operand.hbm [shape: bf16[16,256], index: 1, kind: input, shape index: {}]   ;;  %s3940_s2 = inlined_call_operand.hbm [shape: bf16[256,512], index: 2, kind: input, shape index: {}]   ;;  %s3941_s3 = inlined_call_operand.hbm [shape: bf16[512,256], index: 3, kind: input, shape index: {}]   ;;  %s3942_s4 = inlined_call_operand.vmem [shape: f32[1,256], index: 4, kind: input, shape index: {}]   ;;  %s3943_s5 = inlined_call_operand.vmem [shape: f32[16,256], index: 5, kind: output, shape index: {0}]   ;;  %s3944_s6 = inlined_call_operand.vmem [shape: f32[16,256], index: 6, kind: output, shape index: {1}]  }
   0x1   :  { %12 = sst [smem:[#allocation5]] %s3938_s0 }
   0x2   :  { %13 = vsyncpa [#allocation7], 0 }
   0x3   :  { %15 = vsyncpa [#allocation7 + $0x1], 0 }
   0x4   :  { %16 = vsyncpa [#allocation9], 0  ;;  %s3309_s23 = smov 0   ;;  %s3311_s24 = smov 0  }
   0x5   :  { %s3313_s25 = smov 0   ;;  %s3315_s26 = smov 0  }
   0x6   :  { %s3317_s27 = smov 0   ;;  %s3319_s28 = smov 0  }
   0x7 LB: > { %s2551_s0 = sadd.s32 4294967295, %s3253_s28   ;;  %p54_p0 = scmp.ne.s32.totalorder %s3237_s24, %s3233_s23  ;;  %s3253_s28 = sphi %s3319_s28, %s22_s28   ;;  %s3249_s27 = sphi %s3317_s27, %s3988_s27   ;;  %s3245_s26 = sphi %s3315_s26, %s3987_s26   ;;  %s3241_s25 = sphi %s3313_s25, %s3986_s25   ;;  %s3237_s24 = sphi %s3311_s24, %s3985_s24   ;;  %s3233_s23 = sphi %s3309_s23, %s3984_s23  }
   0x8   : > { %p3339_p1 = scmp.eq.s32.totalorder %s2551_s0, 0  ;;  %p2553_p2 = scmp.ge.s32.totalorder %s3253_s28, 1 }
   0x9   : > { %p195_p3 = scmp.lt.s32.totalorder %s3253_s28, 3  ;;  %s3255_s8 = smov [#allocation8]  }
   0xa   : > { %s3955_s29 = scalar_select %p3339_p1, 1, 0 }
   0xb   : > { %p3347_p4 = por %p3339_p1, %p54_p0  ;;  %p3351_p5 = pnand %p2553_p2, %p195_p3 }
   0xc   : > { %s210_s9 = sshll.u32 %s3255_s8, 4  ;;  %s3256_s11 = smov [#allocation10]   ;;  %s211_s9 = int_to_ptr.vmem [resolvable:$true] %s210_s9 }
   0xd   : > { %p2822_p6 = pneg %p3351_p5  ;;  %s227_s12 = sshll.u32 %s3256_s11, 4  ;;  %s228_s12 = int_to_ptr.vmem [resolvable:$true] %s227_s12 }
   0xe   : > { %s3130_s13 = scalar_lea.vmem %s211_s9, 8192  ;;  %p3138_p12 = scmp.lt.s32.totalorder %s211_s9, %s211_s9 }
   0xf   : > { %p3359_p7 = pnand %p2822_p6, %p3339_p1  ;;  %p3131_p9 = scmp.ne.s32.totalorder %s211_s9, %s3130_s13 }
  0x10   : > { %p3139_p13 = scmp.lt.s32.totalorder %s3130_s13, %s3130_s13 }
  0x11   : > { %p3121_p8 = pneg %p3359_p7 }
  0x12   : > { %p3140_p0 = por %p3139_p13, %p3138_p12 }
  0x13   : > { %p3133_p10 = pnand %p3131_p9, %p3121_p8 }
  0x15   : > { %p3134_p11 = pneg %p3133_p10 }
  0x17   : > { %p3141_p2 = pnand %p3140_p0, %p3134_p11 }
  0x19   : > { %3144 = shalt.err (!%p3141_p2)
}
  0x1a   : > { %s3257_s14 = smov 256   ;;  %s3258_s15 = smov 16  }
  0x1b   : > { %2825 = dma.hbm_to_vmem [thread:$0]  (!%p3359_p7), %s3940_s2, 8192, %s211_s9, [#allocation9], %s3257_s14, %s3257_s14, %s3258_s15  }
  0x1c   : > { %s3156_s18 = scalar_lea.vmem %s228_s12, 8192  ;;  %p3164_p10 = scmp.lt.s32.totalorder %s228_s12, %s228_s12 }
  0x1d   : > { %p3157_p3 = scmp.ne.s32.totalorder %s228_s12, %s3156_s18  ;;  %p3165_p1 = scmp.lt.s32.totalorder %s3156_s18, %s3156_s18 }
  0x1f   : > { %p3159_p6 = pnand %p3157_p3, %p3121_p8  ;;  %p3166_p12 = por %p3165_p1, %p3164_p10 }
  0x21   : > { %p3160_p9 = pneg %p3159_p6 }
  0x23   : > { %p3167_p11 = pnand %p3166_p12, %p3160_p9 }
  0x25   : > { %3170 = shalt.err (!%p3167_p11)
}
  0x26   : > { %s3259_s19 = smov 128   ;;  %s3260_s20 = smov 8  }
  0x27   : > { %2828 = dma.hbm_to_vmem [thread:$0]  (!%p3359_p7), %s3941_s3, 8192, %s228_s12, [#allocation9], %s3259_s19, %s3259_s19, %s3260_s20  }
  0x28   : > { %s34_s23 = sadd.s32 1, %s3249_s27  ;;  %s41_s0 = sadd.s32 1, %s3241_s25 }
  0x29   : > { %p36_p1 = scmp.ge.s32.totalorder %s34_s23, 2  ;;  %p48_p8 = scmp.ne.s32.totalorder %s3241_s25, %s3237_s24 }
  0x2a   : > { %p49_p13 = scmp.eq.s32.totalorder %s3253_s28, 0  ;;  %p2835_p0 = scmp.lt.s32.totalorder %s3253_s28, 2 }
  0x2b   : > { %s3990_s23 = smov (%p36_p1, %s34_s23), 0  ;;  %s249_s8 = sand.u32 1, %s3241_s25  }
  0x2c   : > { %p50_p2 = por %p49_p13, %p48_p8  ;;  %s38_s9 = ssub.s32 %s3249_s27, %s3990_s23 }
  0x2d   : > { %p39_p3 = scmp.eq.s32.totalorder %s38_s9, 0  ;;  %s2558_s11 = sshll.u32 %s249_s8, 3 }
  0x2e   : > { %s2797_s10 = sshll.u32 %s3249_s27, 7  ;;  %s253_s16 = scalar_lea.vmem [#allocation6], %s2558_s11 }
  0x2f   : > { %s3394_s13 = scalar_select %p39_p3, %s3241_s25, %s41_s0  }
  0x30   : > { %s259_s15 = scalar_lea.hbm %s3939_s1, %s2797_s10  ;;  %s261_s17 = sshll.u32 %s253_s16, 4  ;;  %s262_s17 = int_to_ptr.vmem [resolvable:$true] %s261_s17 }
  0x31   : > { %p3401_p7 = pnand %p2835_p0, %p50_p2  ;;  %s250_s19 = scalar_lea.sflag [#allocation7], %s249_s8 }
  0x32   : > { %s3184_s20 = scalar_lea.vmem %s262_s17, 128  ;;  %s3261_s21 = smov [#allocation6]  }
  0x33   : > { %p3173_p6 = pneg %p3401_p7  ;;  %p3185_p9 = scmp.ne.s32.totalorder %s262_s17, %s3184_s20 }
  0x34   : > { %s3189_s22 = sshll.u32 %s3261_s21, 4  ;;  %s3190_s22 = int_to_ptr.vmem [resolvable:$false] %s3189_s22 }
  0x35   : > { %p3187_p10 = pnand %p3185_p9, %p3173_p6  ;;  %s3191_s0 = scalar_lea.vmem %s3190_s22, 256 }
  0x36   : > { %p3192_p11 = scmp.lt.s32.totalorder %s262_s17, %s3190_s22  ;;  %p3193_p1 = scmp.lt.s32.totalorder %s3191_s0, %s3184_s20 }
  0x37   : > { %p3188_p12 = pneg %p3187_p10 }
  0x38   : > { %p3194_p8 = por %p3193_p1, %p3192_p11 }
  0x3a   : > { %p3195_p13 = pnand %p3194_p8, %p3188_p12 }
  0x3c   : > { %3198 = shalt.err (!%p3195_p13)
}
  0x3d   : > { %2832 = dma.hbm_to_vmem [thread:$0]  (!%p3401_p7), %s259_s15, 128, %s262_s17, %s250_s19  }
  0x3e   : > { %270 = sbr.rel (%p3351_p5) target bundleno = 861 (0x35d), region = 36 }
  0x43   : > { %s272_s8 = sand.u32 1, %s3237_s24  }
  0x44   : > { %s3412_s9 = sshll.u32 %s272_s8, 3  ;;  %s273_s11 = scalar_lea.sflag [#allocation7], %s272_s8 }
  0x45   : > { %s276_s10 = scalar_lea.vmem [#allocation6], %s3412_s9 }
  0x46   : > { %3224 = dma.done.wait (%p3347_p4), %s273_s11, 128  }
  0x47   : > { %3226 = vsyncadd (%p3347_p4), %s273_s11, 4294967168  ;;  %p3960_p0 = scmp.ne.s32.totalorder %s3955_s29, 0 }
  0x49   : > { %3228 = dma.done.wait (%p3960_p0), [#allocation9], 16384  }
  0x4a   : > { %3230 = vsyncadd (%p3960_p0), [#allocation9], 4294950912  ;;  %p327_p5 = scmp.lt.s32.totalorder %s3245_s26, 1  ;;  %s3424_s7 = sld [smem:[#allocation5]]  ;;  %v3262_v0 = vmov 0.0   ;;  %v346_v47 = vld [vmem:[%s276_s10] sm:$0xff] }
  0x4b   : > { %v2901_v1 = vld [vmem:[#allocation8 + $0xe4] ss:$16 sps:$4 sm:$0xff]   ;;  %v2903_v2 = vld [vmem:[#allocation8 + $0xec] ss:$16 sps:$4 sm:$0xff]   ;;  %v2905_v3 = vld [vmem:[#allocation8 + $0xe0] ss:$16 sps:$4 sm:$0xff]   ;;  %v2570_v48 = vcombine.high %v346_v47, %v346_v47 }
  0x4c   : > { %s3992_s26 = smov (!%p327_p5, %s3245_s26), 1  ;;  %738 = vmatprep.subr.bf16.mxu0 %v2901_v1  ;;  %v2906_v4 = vld [vmem:[#allocation8 + $0xe8] ss:$16 sps:$4 sm:$0xff]   ;;  %779 = vmatprep.subr.bf16.mxu1 %v2903_v2  ;;  %v2907_v5 = vld [vmem:[#allocation8 + $0xc4] ss:$16 sps:$4 sm:$0xff]  }
  0x4d   : > { %s2798_s14 = sshll.u32 %s3992_s26, 4  ;;  %739 = vmatpush1.bf16.msra.mxu0 %v2905_v3  ;;  %780 = vmatpush1.bf16.msra.mxu1 %v2906_v4  ;;  %v2909_v6 = vld [vmem:[#allocation8 + $0xcc] ss:$16 sps:$4 sm:$0xff]   ;;  %v2911_v7 = vld [vmem:[#allocation8 + $0xc0] ss:$16 sps:$4 sm:$0xff]   ;;  %v2569_v3 = vcombine.low %v346_v47, %v346_v47 }
  0x4e   : > { %s3430_s16 = scalar_lea.vmem %s3943_s5, %s2798_s14  ;;  %s3435_s18 = scalar_lea.vmem %s3944_s6, %s2798_s14  ;;  %740 = vmatprep.subr.bf16.mxu0 %v2907_v5  ;;  %v2912_v8 = vld [vmem:[#allocation8 + $0xc8] ss:$16 sps:$4 sm:$0xff]   ;;  %781 = vmatprep.subr.bf16.mxu1 %v2909_v6  ;;  %v2913_v9 = vld [vmem:[#allocation8 + $0xa4] ss:$16 sps:$4 sm:$0xff]   ;;  %v2915_v10 = vld [vmem:[#allocation8 + $0xac] ss:$16 sps:$4 sm:$0xff]  }
  0x4f   : > { %342 = vst [vmem:[%s3430_s16] sm:$0xff] %v3262_v0  ;;  %343 = vst [vmem:[%s3430_s16 + $0x8] sm:$0xff] %v3262_v0  ;;  %v2917_v11 = vld [vmem:[#allocation8 + $0xa0] ss:$16 sps:$4 sm:$0xff]   ;;  %v2918_v12 = vld [vmem:[#allocation8 + $0xa8] ss:$16 sps:$4 sm:$0xff]   ;;  %770 = vmatprep.mubr.bf16.mxu0 %v2570_v48  ;;  %811 = vmatprep.mubr.bf16.mxu1 %v2570_v48 }
  0x50   : > { %344 = vst [vmem:[%s3435_s18] sm:$0xff] %v3262_v0  ;;  %345 = vst [vmem:[%s3435_s18 + $0x8] sm:$0xff] %v3262_v0  ;;  %v2919_v13 = vld [vmem:[#allocation8 + $0x84] ss:$16 sps:$4 sm:$0xff]   ;;  %v2921_v14 = vld [vmem:[#allocation8 + $0x8c] ss:$16 sps:$4 sm:$0xff]   ;;  %p2635_p4 = scmp.eq.s32.totalorder %s3424_s7, 0 }
  0x51   : > { %741 = vmatpush1.bf16.msra.mxu0 %v2911_v7  ;;  %782 = vmatpush1.bf16.msra.mxu1 %v2912_v8  ;;  %v2923_v15 = vld [vmem:[#allocation8 + $0x80] ss:$16 sps:$4 sm:$0xff]   ;;  %v2924_v16 = vld [vmem:[#allocation8 + $0x88] ss:$16 sps:$4 sm:$0xff]   ;;  %v2925_v17 = vld [vmem:[#allocation8 + $0x64] ss:$16 sps:$4 sm:$0xff]  }
  0x52   : > { %742 = vmatprep.subr.bf16.mxu0 %v2913_v9  ;;  %783 = vmatprep.subr.bf16.mxu1 %v2915_v10  ;;  %v2927_v18 = vld [vmem:[#allocation8 + $0x6c] ss:$16 sps:$4 sm:$0xff]   ;;  %v2929_v19 = vld [vmem:[#allocation8 + $0x60] ss:$16 sps:$4 sm:$0xff]   ;;  %v2930_v20 = vld [vmem:[#allocation8 + $0x68] ss:$16 sps:$4 sm:$0xff]  }
  0x53   : > { %v2931_v21 = vld [vmem:[#allocation8 + $0x44] ss:$16 sps:$4 sm:$0xff]   ;;  %v2933_v22 = vld [vmem:[#allocation8 + $0x4c] ss:$16 sps:$4 sm:$0xff]   ;;  %v2935_v23 = vld [vmem:[#allocation8 + $0x40] ss:$16 sps:$4 sm:$0xff]  }
  0x54   : > { %v2936_v24 = vld [vmem:[#allocation8 + $0x48] ss:$16 sps:$4 sm:$0xff]   ;;  %v2937_v25 = vld [vmem:[#allocation8 + $0x24] ss:$16 sps:$4 sm:$0xff]   ;;  %v2939_v26 = vld [vmem:[#allocation8 + $0x2c] ss:$16 sps:$4 sm:$0xff]  }
  0x55   : > { %743 = vmatpush1.bf16.msra.mxu0 %v2917_v11  ;;  %784 = vmatpush1.bf16.msra.mxu1 %v2918_v12  ;;  %v2941_v27 = vld [vmem:[#allocation8 + $0x20] ss:$16 sps:$4 sm:$0xff]   ;;  %v2942_v28 = vld [vmem:[#allocation8 + $0x28] ss:$16 sps:$4 sm:$0xff]   ;;  %v2943_v29 = vld [vmem:[#allocation8 + $0x4] ss:$16 sps:$4 sm:$0xff]  }
  0x56   : > { %744 = vmatprep.subr.bf16.mxu0 %v2919_v13  ;;  %785 = vmatprep.subr.bf16.mxu1 %v2921_v14  ;;  %v2945_v30 = vld [vmem:[#allocation8 + $0xc] ss:$16 sps:$4 sm:$0xff]   ;;  %v2947_v31 = vld [vmem:[#allocation8] ss:$16 sps:$4 sm:$0xff]   ;;  %v2948_v32 = vld [vmem:[#allocation8 + $0x8] ss:$16 sps:$4 sm:$0xff]  }
  0x57   : > { %v2949_v33 = vld [vmem:[#allocation8 + $0x1e4] ss:$16 sps:$4 sm:$0xff]   ;;  %v2951_v34 = vld [vmem:[#allocation8 + $0x1ec] ss:$16 sps:$4 sm:$0xff]   ;;  %v2953_v35 = vld [vmem:[#allocation8 + $0x1e0] ss:$16 sps:$4 sm:$0xff]  }
  0x58   : > { %v2954_v36 = vld [vmem:[#allocation8 + $0x1e8] ss:$16 sps:$4 sm:$0xff]   ;;  %v2955_v37 = vld [vmem:[#allocation8 + $0x1c4] ss:$16 sps:$4 sm:$0xff]   ;;  %v2957_v38 = vld [vmem:[#allocation8 + $0x1cc] ss:$16 sps:$4 sm:$0xff]  }
  0x59   : > { %745 = vmatpush1.bf16.msra.mxu0 %v2923_v15  ;;  %786 = vmatpush1.bf16.msra.mxu1 %v2924_v16  ;;  %v2959_v39 = vld [vmem:[#allocation8 + $0x1c0] ss:$16 sps:$4 sm:$0xff]   ;;  %v2960_v40 = vld [vmem:[#allocation8 + $0x1c8] ss:$16 sps:$4 sm:$0xff]   ;;  %v2961_v41 = vld [vmem:[#allocation8 + $0x1a4] ss:$16 sps:$4 sm:$0xff]  }
  0x5a   : > { %746 = vmatprep.subr.bf16.mxu0 %v2925_v17  ;;  %787 = vmatprep.subr.bf16.mxu1 %v2927_v18  ;;  %v2963_v42 = vld [vmem:[#allocation8 + $0x1ac] ss:$16 sps:$4 sm:$0xff]   ;;  %v2965_v43 = vld [vmem:[#allocation8 + $0x1a0] ss:$16 sps:$4 sm:$0xff]   ;;  %v2966_v44 = vld [vmem:[#allocation8 + $0x1a8] ss:$16 sps:$4 sm:$0xff]  }
  0x5b   : > { %v2967_v45 = vld [vmem:[#allocation8 + $0x184] ss:$16 sps:$4 sm:$0xff]   ;;  %v2969_v46 = vld [vmem:[#allocation8 + $0x18c] ss:$16 sps:$4 sm:$0xff]   ;;  %v2971_v49 = vld [vmem:[#allocation8 + $0x180] ss:$16 sps:$4 sm:$0xff]  }
  0x5c   : > { %v2972_v50 = vld [vmem:[#allocation8 + $0x188] ss:$16 sps:$4 sm:$0xff]   ;;  %v2973_v51 = vld [vmem:[#allocation8 + $0x164] ss:$16 sps:$4 sm:$0xff]   ;;  %v2975_v52 = vld [vmem:[#allocation8 + $0x16c] ss:$16 sps:$4 sm:$0xff]  }
  0x5d   : > { %747 = vmatpush1.bf16.msra.mxu0 %v2929_v19  ;;  %788 = vmatpush1.bf16.msra.mxu1 %v2930_v20  ;;  %v2977_v53 = vld [vmem:[#allocation8 + $0x160] ss:$16 sps:$4 sm:$0xff]   ;;  %v2978_v54 = vld [vmem:[#allocation8 + $0x168] ss:$16 sps:$4 sm:$0xff]   ;;  %v2979_v55 = vld [vmem:[#allocation8 + $0x144] ss:$16 sps:$4 sm:$0xff]  }
  0x5e   : > { %748 = vmatprep.subr.bf16.mxu0 %v2931_v21  ;;  %789 = vmatprep.subr.bf16.mxu1 %v2933_v22  ;;  %v2981_v56 = vld [vmem:[#allocation8 + $0x14c] ss:$16 sps:$4 sm:$0xff]   ;;  %v2983_v57 = vld [vmem:[#allocation8 + $0x140] ss:$16 sps:$4 sm:$0xff]   ;;  %v2984_v58 = vld [vmem:[#allocation8 + $0x148] ss:$16 sps:$4 sm:$0xff]  }
  0x5f   : > { %v2985_v59 = vld [vmem:[#allocation8 + $0x124] ss:$16 sps:$4 sm:$0xff]   ;;  %v2987_v60 = vld [vmem:[#allocation8 + $0x12c] ss:$16 sps:$4 sm:$0xff]   ;;  %v2989_v61 = vld [vmem:[#allocation8 + $0x120] ss:$16 sps:$4 sm:$0xff]  }
  0x60   : > { %v2990_v62 = vld [vmem:[#allocation8 + $0x128] ss:$16 sps:$4 sm:$0xff]   ;;  %v2991_v63 = vld [vmem:[#allocation8 + $0x104] ss:$16 sps:$4 sm:$0xff]   ;;  %v2993_v0 = vld [vmem:[#allocation8 + $0x10c] ss:$16 sps:$4 sm:$0xff]  }
  0x61   : > { %749 = vmatpush1.bf16.msra.mxu0 %v2935_v23  ;;  %790 = vmatpush1.bf16.msra.mxu1 %v2936_v24  ;;  %v2995_v1 = vld [vmem:[#allocation8 + $0x100] ss:$16 sps:$4 sm:$0xff]   ;;  %v2996_v2 = vld [vmem:[#allocation8 + $0x108] ss:$16 sps:$4 sm:$0xff]  }
  0x62   : > { %750 = vmatprep.subr.bf16.mxu0 %v2937_v25  ;;  %791 = vmatprep.subr.bf16.mxu1 %v2939_v26 }
  0x65   : > { %751 = vmatpush1.bf16.msra.mxu0 %v2941_v27  ;;  %792 = vmatpush1.bf16.msra.mxu1 %v2942_v28 }
  0x66   : > { %752 = vmatprep.subr.bf16.mxu0 %v2943_v29  ;;  %793 = vmatprep.subr.bf16.mxu1 %v2945_v30 }
  0x69   : > { %753 = vmatpush1.bf16.msra.mxu0 %v2947_v31  ;;  %794 = vmatpush1.bf16.msra.mxu1 %v2948_v32 }
  0x6a   : > { %754 = vmatprep.subr.bf16.mxu0 %v2949_v33  ;;  %795 = vmatprep.subr.bf16.mxu1 %v2951_v34 }
  0x6d   : > { %755 = vmatpush2.bf16.msra.mxu0 %v2953_v35  ;;  %796 = vmatpush2.bf16.msra.mxu1 %v2954_v36 }
  0x6e   : > { %756 = vmatprep.subr.bf16.mxu0 %v2955_v37  ;;  %797 = vmatprep.subr.bf16.mxu1 %v2957_v38 }
  0x71   : > { %757 = vmatpush2.bf16.msra.mxu0 %v2959_v39  ;;  %798 = vmatpush2.bf16.msra.mxu1 %v2960_v40 }
  0x72   : > { %758 = vmatprep.subr.bf16.mxu0 %v2961_v41  ;;  %799 = vmatprep.subr.bf16.mxu1 %v2963_v42 }
  0x75   : > { %759 = vmatpush2.bf16.msra.mxu0 %v2965_v43  ;;  %800 = vmatpush2.bf16.msra.mxu1 %v2966_v44 }
  0x76   : > { %760 = vmatprep.subr.bf16.mxu0 %v2967_v45  ;;  %801 = vmatprep.subr.bf16.mxu1 %v2969_v46 }
  0x79   : > { %761 = vmatpush2.bf16.msra.mxu0 %v2971_v49  ;;  %802 = vmatpush2.bf16.msra.mxu1 %v2972_v50 }
  0x7a   : > { %762 = vmatprep.subr.bf16.mxu0 %v2973_v51  ;;  %803 = vmatprep.subr.bf16.mxu1 %v2975_v52 }
  0x7d   : > { %763 = vmatpush2.bf16.msra.mxu0 %v2977_v53  ;;  %804 = vmatpush2.bf16.msra.mxu1 %v2978_v54 }
  0x7e   : > { %764 = vmatprep.subr.bf16.mxu0 %v2979_v55  ;;  %805 = vmatprep.subr.bf16.mxu1 %v2981_v56 }
  0x81   : > { %765 = vmatpush2.bf16.msra.mxu0 %v2983_v57  ;;  %806 = vmatpush2.bf16.msra.mxu1 %v2984_v58 }
  0x82   : > { %766 = vmatprep.subr.bf16.mxu0 %v2985_v59  ;;  %807 = vmatprep.subr.bf16.mxu1 %v2987_v60 }
  0x85   : > { %767 = vmatpush2.bf16.msra.mxu0 %v2989_v61  ;;  %808 = vmatpush2.bf16.msra.mxu1 %v2990_v62 }
  0x86   : > { %768 = vmatprep.subr.bf16.mxu0 %v2991_v63  ;;  %809 = vmatprep.subr.bf16.mxu1 %v2993_v0 }
  0x89   : > { %769 = vmatpush2.bf16.msra.mxu0 %v2995_v1  ;;  %810 = vmatpush2.bf16.msra.mxu1 %v2996_v2 }
  0x8c   : > { %771 = vmatmul.mubr.bf16.vlgmr.msra.gmra.mxu0 %v2569_v3  ;;  %812 = vmatmul.mubr.bf16.vlgmr.msra.gmra.mxu1 %v2569_v3 }
 0x14c   : > { %v3443_v4 = vpop.f32.mrf.mxu0  ;;  %v3445_v5 = vpop.f32.mrf.mxu1 }
 0x14e   : > { %v3447_v6 = vpop.f32.mrf.mxu0  ;;  %v3449_v7 = vpop.f32.mrf.mxu1  ;;  %824 = sbr.rel (%p2635_p4) target bundleno = 511 (0x1ff), region = 56 }
 0x150   : > { %v776_v8 = vpop.f32.mrf.mxu0  ;;  %v817_v9 = vpop.f32.mrf.mxu1 }
 0x152   : > { %v777_v10 = vpop.f32.mrf.mxu0  ;;  %v818_v11 = vpop.f32.mrf.mxu1 }
 0x153   : > { %v3453_v12 = vand.u32 2147483647, %v3443_v4  ;;  %v3456_v13 = vand.u32 2147483647, %v3445_v5  ;;  %v3461_v15 = vand.u32 2147483647, %v3447_v6  ;;  %v921_v56 = vlaneseq }
 0x154   : > { %v3464_v16 = vand.u32 2147483647, %v3449_v7  ;;  %vm852_vm1 = vcmp.lt.f32.partialorder %v3443_v4, 0.0  ;;  %vm855_vm2 = vcmp.lt.s32.totalorder %v3443_v4, 0  ;;  %vm857_vm3 = vcmp.eq.f32.partialorder %v3445_v5, 0.0 }
 0x155   : > { %v828_v14 = vmax.f32 %v3453_v12, %v3456_v13  ;;  %v827_v18 = vmin.f32 %v3453_v12, %v3456_v13  ;;  %vm849_vm0 = vcmp.gt.f32.partialorder %v3456_v13, %v3453_v12  ;;  %vm859_vm4 = vcmp.ne.f32.partialorder %v3443_v4, %v3443_v4 }
 0x156   : > { %v875_v17 = vmax.f32 %v3461_v15, %v3464_v16  ;;  %v874_v21 = vmin.f32 %v3461_v15, %v3464_v16  ;;  %vm860_vm5 = vcmp.ne.f32.partialorder %v3445_v5, %v3445_v5  ;;  %v922_v61 = vshrl.u32 %v921_v56, 7 }
 0x157   : > { %2999 = vrcp.f32 %v828_v14  ;;  %vm865_vm6 = vcmp.eq.s32.totalorder %v3453_v12, inf  ;;  %vm866_vm7 = vcmp.eq.s32.totalorder %v3456_v13, inf  ;;  %v3263_v1 = vmov 0.0   ;;  %vm3486_vm9 = vmor %vm859_vm4, %vm860_vm5  ;;  %v919_v12 = vld [vmem:[%s3942_s4] sm:$0x3] }
 0x158   : > { %3001 = vrcp.f32 %v875_v17  ;;  %v856_v2 = vsel %vm855_vm2, 3.1415927, %v3263_v1  ;;  %v870_v3 = vand.u32 2147483648, %v3445_v5  ;;  %vm896_vm8 = vcmp.gt.f32.partialorder %v3464_v16, %v3461_v15  ;;  %vm867_vm12 = vmand %vm865_vm6, %vm866_vm7 }
 0x159   : > { %v3264_v9 = vmov 0.7853982   ;;  %vm899_vm10 = vcmp.lt.f32.partialorder %v3447_v6, 0.0  ;;  %vm902_vm11 = vcmp.lt.s32.totalorder %v3447_v6, 0  ;;  %vm906_vm13 = vcmp.ne.f32.partialorder %v3447_v6, %v3447_v6 }
 0x15a   : > { %v864_v10 = vsel %vm852_vm1, 2.3561945, %v3264_v9  ;;  %vm907_vm14 = vcmp.ne.f32.partialorder %v3449_v7, %v3449_v7  ;;  %v923_v14 = vsub.s32 0, %v922_v61  ;;  %vm912_vm15 = vcmp.eq.s32.totalorder %v3461_v15, inf }
 0x15b   : > { %vm908_vm2 = vmor %vm906_vm13, %vm907_vm14  ;;  %v3266_v56 = vmov 2475754826  }
 0x164   : > { %v3000_v19 = vpop.eup %2999 }
 0x165   : > { %v830_v20 = vmul.f32 %v3000_v19, %v827_v18  ;;  %v3002_v23 = vpop.eup %3001 }
 0x166   : > { %v877_v25 = vmul.f32 %v3002_v23, %v874_v21  ;;  %v903_v21 = vsel %vm902_vm11, 3.1415927, %v3263_v1  ;;  %v911_v23 = vsel %vm899_vm10, 2.3561945, %v3264_v9 }
 0x167   : > { %v831_v22 = vmul.f32 %v830_v20, %v830_v20 }
 0x168   : > { %v878_v27 = vmul.f32 %v877_v25, %v877_v25 }
 0x169   : > { %v832_v24 = vmul.f32 0.002785687, %v831_v22 }
 0x16a   : > { %v879_v29 = vmul.f32 0.002785687, %v878_v27 }
 0x16b   : > { %v833_v26 = vadd.f32 -0.015866, %v832_v24 }
 0x16c   : > { %v880_v31 = vadd.f32 -0.015866, %v879_v29  ;;  %v917_v29 = vand.u32 2147483648, %v3449_v7 }
 0x16d   : > { %v834_v28 = vmul.f32 %v833_v26, %v831_v22 }
 0x16e   : > { %v881_v33 = vmul.f32 %v880_v31, %v878_v27 }
 0x16f   : > { %v835_v30 = vadd.f32 0.04247222, %v834_v28 }
 0x170   : > { %v882_v35 = vadd.f32 0.04247222, %v881_v33 }
 0x171   : > { %v836_v32 = vmul.f32 %v835_v30, %v831_v22 }
 0x172   : > { %v883_v37 = vmul.f32 %v882_v35, %v878_v27 }
 0x173   : > { %v837_v34 = vadd.f32 -0.074975304, %v836_v32 }
 0x174   : > { %v884_v39 = vadd.f32 -0.074975304, %v883_v37 }
 0x175   : > { %v838_v36 = vmul.f32 %v837_v34, %v831_v22 }
 0x176   : > { %v885_v41 = vmul.f32 %v884_v39, %v878_v27 }
 0x177   : > { %v839_v38 = vadd.f32 0.1064488, %v838_v36 }
 0x178   : > { %v886_v43 = vadd.f32 0.1064488, %v885_v41 }
 0x179   : > { %v840_v40 = vmul.f32 %v839_v38, %v831_v22 }
 0x17a   : > { %v887_v45 = vmul.f32 %v886_v43, %v878_v27 }
 0x17b   : > { %v841_v42 = vadd.f32 -0.14207031, %v840_v40 }
 0x17c   : > { %v888_v47 = vadd.f32 -0.14207031, %v887_v45 }
 0x17d   : > { %v842_v44 = vmul.f32 %v841_v42, %v831_v22 }
 0x17e   : > { %v889_v49 = vmul.f32 %v888_v47, %v878_v27 }
 0x17f   : > { %v843_v46 = vadd.f32 0.19993454, %v842_v44 }
 0x180   : > { %v890_v51 = vadd.f32 0.19993454, %v889_v49 }
 0x181   : > { %v844_v48 = vmul.f32 %v843_v46, %v831_v22 }
 0x182   : > { %v891_v53 = vmul.f32 %v890_v51, %v878_v27 }
 0x183   : > { %v845_v50 = vadd.f32 -0.33333147, %v844_v48 }
 0x184   : > { %v892_v55 = vadd.f32 -0.33333147, %v891_v53 }
 0x185   : > { %v846_v52 = vmul.f32 %v845_v50, %v831_v22 }
 0x186   : > { %v893_v58 = vmul.f32 %v892_v55, %v878_v27 }
 0x187   : > { %v847_v54 = vmul.f32 %v846_v52, %v830_v20 }
 0x188   : > { %v894_v60 = vmul.f32 %v893_v58, %v877_v25  ;;  %v3267_v58 = vmov 2131351028  }
 0x189   : > { %v848_v57 = vadd.f32 %v847_v54, %v830_v20  ;;  %v3265_v54 = vmov 683565275  }
 0x18a   : > { %v895_v63 = vadd.f32 %v894_v60, %v877_v25  ;;  %v927_v25 = vsub.s32 1, %v922_v61  ;;  %v3268_v60 = vmov 2102212464  }
 0x18b   : > { %v850_v59 = vsub.f32 1.5707964, %v848_v57 }
 0x18c   : > { %v897_v11 = vsub.f32 1.5707964, %v895_v63  ;;  %v928_v32 = vrot.slane %v919_v12, %v927_v25 }
 0x18d   : > { %v851_v62 = vsel %vm849_vm0, %v850_v59, %v848_v57  ;;  %vm913_vm0 = vcmp.eq.s32.totalorder %v3464_v16, inf  ;;  %v924_v16 = vrot.slane %v919_v12, %v923_v14 }
 0x18e   : > { %v853_v0 = vsub.f32 3.1415927, %v851_v62  ;;  %v898_v18 = vsel %vm896_vm8, %v897_v11, %v895_v63 }
 0x18f   : > { %v900_v20 = vsub.f32 3.1415927, %v898_v18 }
 0x190   : > { %v854_v13 = vsel %vm852_vm1, %v853_v0, %v851_v62  ;;  %vm904_vm1 = vcmp.eq.f32.partialorder %v3449_v7, 0.0  ;;  %v3269_v62 = vmov 920167782  }
 0x191   : > { %v858_v17 = vsel %vm857_vm3, %v856_v2, %v854_v13  ;;  %v901_v15 = vsel %vm899_vm10, %v900_v20, %v898_v18  ;;  %vm914_vm3 = vmand %vm912_vm15, %vm913_vm0 }
 0x192   : > { %v862_v19 = vsel %vm3486_vm9, nan, %v858_v17  ;;  %v905_v26 = vsel %vm904_vm1, %v903_v21, %v901_v15 }
 0x193   : > { %v868_v22 = vsel %vm867_vm12, %v864_v10, %v862_v19  ;;  %v909_v28 = vsel %vm908_vm2, nan, %v905_v26  ;;  %v3270_v10 = vmov 1326507024  }
 0x194   : > { %v869_v24 = vand.u32 2147483647, %v868_v22  ;;  %v915_v30 = vsel %vm914_vm3, %v911_v23, %v909_v28 }
 0x195   : > { %v916_v31 = vand.u32 2147483647, %v915_v30 }
 0x196   : > { %v871_v27 = vor.u32 %v870_v3, %v869_v24 }
 0x197   : > { %v918_v34 = vor.u32 %v917_v29, %v916_v31 }
 0x198   : > { %v3517_v33 = vmul.f32 %v924_v16, %v871_v27 }
 0x199   : > { %v3521_v37 = vmul.f32 %v928_v32, %v918_v34 }
 0x19a   : > { %v953_v35 = vand.u32 2147483647, %v3517_v33  ;;  %v956_v36 = vand.u32 2139095040, %v3517_v33  ;;  %vm955_vm2 = vcmp.lt.s32.totalorder %v3517_v33, 0 }
 0x19b   : > { %v1056_v41 = vand.u32 2147483647, %v3521_v37  ;;  %v1059_v42 = vand.u32 2139095040, %v3521_v37 }
 0x19c   : > { %v957_v38 = vshrl.u32 %v956_v36, 23  ;;  %v960_v39 = vand.u32 8388607, %v953_v35  ;;  %vm3585_vm3 = vcmp.le.f32.partialorder %v953_v35, 0.7853982 }
 0x19d   : > { %v1060_v45 = vshrl.u32 %v1059_v42, 23  ;;  %v1063_v48 = vand.u32 8388607, %v1056_v41 }
 0x19e   : > { %v2636_v40 = vadd.s32 4294967169, %v957_v38  ;;  %v961_v44 = vor.u32 8388608, %v960_v39 }
 0x19f   : > { %v2640_v47 = vadd.s32 4294967169, %v1060_v45  ;;  %v1064_v0 = vor.u32 8388608, %v1063_v48 }
 0x1a0   : > { %v963_v43 = vadd.s32 1, %v2636_v40  ;;  %v3529_v51 = vshll.u32 %v961_v44, 8 }
 0x1a1   : > { %v1066_v52 = vadd.s32 1, %v2640_v47  ;;  %v1104_v32 = vshll.u32 %v1064_v0, 8 }
 0x1a2   : > { %vm964_vm4 = vcmp.gt.s32.totalorder %v963_v43, 0 }
 0x1a3   : > { %v965_v46 = vsel %vm964_vm4, %v963_v43, 0  ;;  %vm1067_vm8 = vcmp.gt.s32.totalorder %v1066_v52, 0  ;;  %vm1058_vm4 = vcmp.lt.s32.totalorder %v3521_v37, 0 }
 0x1a4   : > { %v966_v49 = vshrl.u32 %v965_v46, 5  ;;  %v967_v50 = vand.u32 31, %v965_v46  ;;  %v1068_v19 = vsel %vm1067_vm8, %v1066_v52, 0 }
 0x1a5   : > { %v1069_v27 = vshrl.u32 %v1068_v19, 5  ;;  %v1070_v28 = vand.u32 31, %v1068_v19 }
 0x1a6   : > { %v968_v53 = vsub.s32 32, %v967_v50  ;;  %v970_v55 = vshll.u32 %v3265_v54, %v967_v50  ;;  %v973_v57 = vshll.u32 %v3266_v56, %v967_v50  ;;  %v976_v59 = vshll.u32 %v3267_v58, %v967_v50 }
 0x1a7   : > { %v979_v61 = vshll.u32 %v3268_v60, %v967_v50  ;;  %v982_v63 = vshll.u32 %v3269_v62, %v967_v50  ;;  %vm985_vm5 = vcmp.lt.s32.totalorder %v966_v49, 1  ;;  %vm986_vm6 = vcmp.lt.s32.totalorder %v966_v49, 2 }
 0x1a8   : > { %v969_v1 = vshrl.u32 %v3265_v54, %v968_v53  ;;  %v971_v2 = vshrl.u32 %v3266_v56, %v968_v53  ;;  %v974_v3 = vshrl.u32 %v3267_v58, %v968_v53  ;;  %v977_v8 = vshrl.u32 %v3268_v60, %v968_v53 }
 0x1a9   : > { %v980_v9 = vshrl.u32 %v3269_v62, %v968_v53  ;;  %v983_v11 = vshrl.u32 %v3270_v10, %v968_v53  ;;  %vm988_vm7 = vcmp.lt.s32.totalorder %v966_v49, 4  ;;  %vm987_vm9 = vcmp.lt.s32.totalorder %v966_v49, 3 }
 0x1aa   : > { %v972_v13 = vor.u32 %v971_v2, %v970_v55  ;;  %v975_v14 = vor.u32 %v974_v3, %v973_v57  ;;  %v978_v17 = vor.u32 %v977_v8, %v976_v59  ;;  %v1071_v40 = vsub.s32 32, %v1070_v28 }
 0x1ab   : > { %v981_v18 = vor.u32 %v980_v9, %v979_v61  ;;  %v984_v12 = vor.u32 %v983_v11, %v982_v63  ;;  %v1073_v42 = vshll.u32 %v3265_v54, %v1070_v28  ;;  %v1076_v43 = vshll.u32 %v3266_v56, %v1070_v28 }
 0x1ac   : > { %v989_v20 = vsel %vm985_vm5, %v969_v1, %v972_v13  ;;  %v990_v21 = vsel %vm988_vm7, %v978_v17, 2102212464  ;;  %v993_v22 = vsel %vm985_vm5, %v972_v13, %v975_v14  ;;  %v997_v23 = vsel %vm985_vm5, %v975_v14, %v978_v17 }
 0x1ad   : > { %v991_v24 = vsel %vm987_vm9, %v975_v14, %v990_v21  ;;  %v994_v15 = vsel %vm988_vm7, %v981_v18, 920167782  ;;  %v998_v16 = vsel %vm988_vm7, %v984_v12, 1326507024  ;;  %v1079_v44 = vshll.u32 %v3267_v58, %v1070_v28 }
 0x1ae   : > { %v995_v25 = vsel %vm987_vm9, %v978_v17, %v994_v15  ;;  %v999_v26 = vsel %vm987_vm9, %v981_v18, %v998_v16  ;;  %v992_v29 = vsel %vm986_vm6, %v989_v20, %v991_v24  ;;  %v1082_v46 = vshll.u32 %v3268_v60, %v1070_v28 }
 0x1af   : > { %v996_v30 = vsel %vm986_vm6, %v993_v22, %v995_v25  ;;  %v1000_v31 = vsel %vm986_vm6, %v997_v23, %v999_v26  ;;  %v1008_v45 = vmul.u32 %v3529_v51, %v992_v29  ;;  %v1085_v47 = vshll.u32 %v3269_v62, %v1070_v28 }
 0x1b0   : > { %v3538_v34 = vmul.u32.u64.low %v3529_v51, %v1000_v31  ;;  %v3539_v36 = vmul.u32.u64.high %v3529_v51, %v1000_v31, %v3538_v34  ;;  %v3542_v38 = vmul.u32.u64.low %v3529_v51, %v996_v30  ;;  %v3543_v39 = vmul.u32.u64.high %v3529_v51, %v996_v30, %v3542_v38 }
 0x1b1   : > { %vm1088_vm10 = vcmp.lt.s32.totalorder %v1069_v27, 1  ;;  %v1072_v48 = vshrl.u32 %v3265_v54, %v1071_v40  ;;  %v1074_v49 = vshrl.u32 %v3266_v56, %v1071_v40  ;;  %v1077_v50 = vshrl.u32 %v3267_v58, %v1071_v40 }
 0x1b2   : > { %v1080_v52 = vshrl.u32 %v3268_v60, %v1071_v40  ;;  %vm1010_vm11 = vc.u32 %v3539_v36, %v3542_v38  ;;  %v1011_v53 = vadd.s32 1, %v3543_v39  ;;  %v1083_v55 = vshrl.u32 %v3269_v62, %v1071_v40 }
 0x1b3   : > { %vm1089_vm12 = vcmp.lt.s32.totalorder %v1069_v27, 2  ;;  %v1075_v57 = vor.u32 %v1074_v49, %v1073_v42  ;;  %v1078_v59 = vor.u32 %v1077_v50, %v1076_v43  ;;  %v1086_v63 = vshrl.u32 %v3270_v10, %v1071_v40 }
 0x1b4   : > { %v1081_v61 = vor.u32 %v1080_v52, %v1079_v44  ;;  %v1012_v0 = vsel %vm1010_vm11, %v1011_v53, %v3543_v39  ;;  %v1084_v51 = vor.u32 %v1083_v55, %v1082_v46  ;;  %vm1090_vm13 = vcmp.lt.s32.totalorder %v1069_v27, 3 }
 0x1b5   : > { %vm1091_vm14 = vcmp.lt.s32.totalorder %v1069_v27, 4  ;;  %v1013_v1 = vadd.s32 %v1012_v0, %v1008_v45  ;;  %v1087_v54 = vor.u32 %v1086_v63, %v1085_v47  ;;  %v1092_v56 = vsel %vm1088_vm10, %v1072_v48, %v1075_v57 }
 0x1b6   : > { %v1093_v58 = vsel %vm1091_vm14, %v1081_v61, 2102212464  ;;  %v1096_v2 = vsel %vm1088_vm10, %v1075_v57, %v1078_v59  ;;  %v1097_v3 = vsel %vm1091_vm14, %v1084_v51, 920167782  ;;  %v1100_v62 = vsel %vm1088_vm10, %v1078_v59, %v1081_v61 }
 0x1b7   : > { %v1094_v60 = vsel %vm1090_vm13, %v1078_v59, %v1093_v58  ;;  %v1014_v8 = vadd.s32 536870912, %v1013_v1  ;;  %v1098_v9 = vsel %vm1090_vm13, %v1081_v61, %v1097_v3  ;;  %v1101_v11 = vsel %vm1091_vm14, %v1087_v54, 1326507024 }
 0x1b8   : > { %v1095_v10 = vsel %vm1089_vm12, %v1092_v56, %v1094_v60  ;;  %v1099_v13 = vsel %vm1089_vm12, %v1096_v2, %v1098_v9  ;;  %v1102_v14 = vsel %vm1090_vm13, %v1084_v51, %v1101_v11  ;;  %v1009_v39 = vadd.s32 %v3542_v38, %v3539_v36 }
 0x1b9   : > { %v3554_v17 = vshrl.u32 %v1014_v8, 30  ;;  %v1103_v18 = vsel %vm1089_vm12, %v1100_v62, %v1102_v14  ;;  %v3557_v12 = vmul.u32.u64.low %v1104_v32, %v1099_v13  ;;  %v3558_v19 = vmul.u32.u64.high %v1104_v32, %v1099_v13, %v3557_v12 }
 0x1ba   : > { %v3560_v20 = vmul.u32.u64.low %v1104_v32, %v1103_v18  ;;  %v3561_v21 = vmul.u32.u64.high %v1104_v32, %v1103_v18, %v3560_v20  ;;  %v1111_v23 = vmul.u32 %v1104_v32, %v1095_v10  ;;  %v933_v53 = vmul.f32 %v3443_v4, %v3443_v4 }
 0x1bb   : > { %v1016_v22 = vshll.u32 %v3554_v17, 30  ;;  %v1114_v15 = vadd.s32 1, %v3558_v19  ;;  %v935_v55 = vmul.f32 %v3445_v5, %v3445_v5  ;;  %v934_v61 = vmul.f32 %v3447_v6, %v3447_v6 }
 0x1bc   : > { %vm1113_vm15 = vc.u32 %v3561_v21, %v3557_v12  ;;  %v1112_v63 = vadd.s32 %v3557_v12, %v3561_v21  ;;  %v936_v0 = vmul.f32 %v3449_v7, %v3449_v7  ;;  %v1039_v10 = vsub.s32 4, %v3554_v17 }
 0x1bd   : > { %v1017_v24 = vsub.s32 %v1013_v1, %v1016_v22  ;;  %v1115_v25 = vsel %vm1113_vm15, %v1114_v15, %v3558_v19  ;;  %v3580_v51 = vadd.f32 %v935_v55, %v933_v53  ;;  %vm3607_vm5 = vcmp.le.f32.partialorder %v1056_v41, 0.7853982 }
 0x1be   : > { %v1116_v26 = vadd.s32 %v1115_v25, %v1111_v23  ;;  %v3589_v9 = vadd.f32 %v936_v0, %v934_v61  ;;  %v1040_v19 = vsel %vm955_vm2, %v1039_v10, %v3554_v17  ;;  %vm1045_vm13 = vweird.f32 %v3517_v33 }
 0x1bf   : > { %v1019_v16 = vsub.s32 0, %v1017_v24  ;;  %3003 = vrsqrt.f32 %v3580_v51  ;;  %v1042_v22 = vsel %vm3585_vm3, 0, %v1040_v19  ;;  %vm941_vm8 = vcmp.eq.f32.partialorder %v3580_v51, inf }
 0x1c0   : > { %v1117_v28 = vadd.s32 536870912, %v1116_v26  ;;  %vm943_vm12 = vcmp.eq.f32.partialorder %v3580_v51, 0.0  ;;  %vm948_vm15 = vcmp.eq.f32.partialorder %v3589_v9, inf  ;;  %v951_v61 = vand.u32 2147483648, %v3589_v9 }
 0x1c1   : > { %v2637_v27 = vmin.u32 %v1019_v16, %v1017_v24  ;;  %v1046_v16 = vand.u32 3, %v1042_v22 }
 0x1c2   : > { %v3567_v30 = vshrl.u32 %v1117_v28, 30 }
 0x1c3   : > { %v1021_v29 = vclz %v2637_v27  ;;  %vm1051_vm6 = vcmp.eq.s32.totalorder %v1046_v16, 2  ;;  %vm1048_vm7 = vcmp.eq.s32.totalorder %v1046_v16, 0  ;;  %vm1047_vm9 = vcmp.lt.s32.totalorder %v1046_v16, 2 }
 0x1c4   : > { %v1119_v34 = vshll.u32 %v3567_v30, 30  ;;  %v1142_v15 = vsub.s32 4, %v3567_v30 }
 0x1c5   : > { %v2638_v31 = vadd.s32 4294967294, %v1021_v29 }
 0x1c6   : > { %v1120_v40 = vsub.s32 %v1116_v26, %v1119_v34  ;;  %v1256_v26 = vadd.s32 3, %v1042_v22  ;;  %v1143_v28 = vsel %vm1058_vm4, %v1142_v15, %v3567_v30 }
 0x1c7   : > { %vm2639_vm0 = vcmp.lt.s32.totalorder %v2638_v31, 0 }
 0x1c8   : > { %v1024_v32 = vsel %vm2639_vm0, 0, %v2638_v31  ;;  %v1122_v45 = vsub.s32 0, %v1120_v40  ;;  %v1257_v41 = vand.u32 3, %v1256_v26  ;;  %vm950_vm0 = vcmp.eq.f32.partialorder %v3589_v9, 0.0 }
 0x1c9   : > { %v1025_v42 = vsub.s32 32, %v1024_v32  ;;  %v1026_v43 = vshll.u32 %v1017_v24, %v1024_v32  ;;  %v1029_v44 = vsub.s32 4294967266, %v1024_v32 }
 0x1ca   : > { %v2641_v48 = vmin.u32 %v1122_v45, %v1120_v40  ;;  %vm1259_vm10 = vcmp.eq.s32.totalorder %v1257_v41, 0  ;;  %vm1262_vm11 = vcmp.eq.s32.totalorder %v1257_v41, 2  ;;  %v944_v45 = vand.u32 2147483648, %v3580_v51 }
 0x1cb   : > { %v1027_v46 = vshrl.u32 %v1009_v39, %v1025_v42  ;;  %v1030_v47 = vadd.s32 127, %v1029_v44  ;;  %v1145_v42 = vsel %vm3607_vm5, 0, %v1143_v28  ;;  %vm1258_vm14 = vcmp.lt.s32.totalorder %v1257_v41, 2 }
 0x1cc   : > { %v1124_v52 = vclz %v2641_v48  ;;  %v3004_v27 = vpop.eup %3003  ;;  %v1360_v44 = vadd.s32 3, %v1145_v42 }
 0x1cd   : > { %v1028_v49 = vor.u32 %v1027_v46, %v1026_v43  ;;  %v1031_v50 = vshll.u32 %v1030_v47, 23  ;;  %v940_v32 = vmul.f32 %v3004_v27, %v3580_v51 }
 0x1ce   : > { %v2642_v57 = vadd.s32 4294967294, %v1124_v52  ;;  %v1361_v53 = vand.u32 3, %v1360_v44 }
 0x1cf   : > { %v1032_v36 = vor.u32 4788187, %v1031_v50  ;;  %v1035_v38 = vcvt.s32.f32 %v1028_v49  ;;  %v942_v47 = vsel %vm941_vm8, %v3580_v51, %v940_v32  ;;  %v1149_v49 = vand.u32 3, %v1145_v42 }
 0x1d0   : > { %vm2643_vm1 = vcmp.lt.s32.totalorder %v2642_v57, 0  ;;  %v945_v55 = vsel %vm943_vm12, %v944_v45, %v942_v47 }
 0x1d1   : > { %v1033_v59 = vand.u32 2147483647, %v1032_v36  ;;  %v1127_v54 = vsel %vm2643_vm1, 0, %v2642_v57  ;;  %vm1154_vm1 = vcmp.eq.s32.totalorder %v1149_v49, 2 }
 0x1d2   : > { %v1128_v56 = vsub.s32 32, %v1127_v54  ;;  %v1129_v58 = vshll.u32 %v1120_v40, %v1127_v54  ;;  %v1132_v60 = vsub.s32 4294967266, %v1127_v54 }
 0x1d3   : > { %v1036_v1 = vmul.f32 %v1035_v38, %v1033_v59 }
 0x1d4   : > { %v1130_v62 = vshrl.u32 %v1112_v63, %v1128_v56  ;;  %v1133_v8 = vadd.s32 127, %v1132_v60 }
 0x1d5   : > { %v1037_v3 = vxor.u32 2147483648, %v1036_v1 }
 0x1d6   : > { %v1131_v35 = vor.u32 %v1130_v62, %v1129_v58  ;;  %v1134_v14 = vshll.u32 %v1133_v8, 23 }
 0x1d7   : > { %v1038_v11 = vsel %vm955_vm2, %v1037_v3, %v1036_v1  ;;  %vm1366_vm2 = vcmp.eq.s32.totalorder %v1361_v53, 2 }
 0x1d8   : > { %v1041_v13 = vsel %vm3585_vm3, %v3517_v33, %v1038_v11  ;;  %v1135_v18 = vor.u32 4788187, %v1134_v14  ;;  %v1138_v12 = vcvt.s32.f32 %v1131_v35  ;;  %vm1151_vm3 = vcmp.eq.s32.totalorder %v1149_v49, 0 }
 0x1d9   : > { %3005 = vcosq.f32 %v1041_v13 }
 0x1da   : > { %3007 = vsinq.f32 %v1041_v13  ;;  %v1136_v20 = vand.u32 2147483647, %v1135_v18 }
 0x1db   : > { %3009 = vrsqrt.f32 %v3589_v9 }
 0x1dc   : > { %v1139_v21 = vmul.f32 %v1138_v12, %v1136_v20 }
 0x1de   : > { %v1140_v24 = vxor.u32 2147483648, %v1139_v21 }
 0x1e0   : > { %v1141_v25 = vsel %vm1058_vm4, %v1140_v24, %v1139_v21  ;;  %vm1363_vm4 = vcmp.eq.s32.totalorder %v1361_v53, 0 }
 0x1e1   : > { %v1144_v17 = vsel %vm3607_vm5, %v3521_v37, %v1141_v25  ;;  %vm1150_vm5 = vcmp.lt.s32.totalorder %v1149_v49, 2 }
 0x1e2   : > { %3011 = vcosq.f32 %v1144_v17 }
 0x1e3   : > { %3013 = vsinq.f32 %v1144_v17 }
 0x1e6   : > { %v3006_v29 = vpop.eup %3005 }
 0x1e7   : > { %v3008_v31 = vpop.eup %3007  ;;  %v1052_v34 = vxor.u32 2147483648, %v3006_v29 }
 0x1e8   : > { %v3010_v39 = vpop.eup %3009  ;;  %v1049_v40 = vxor.u32 2147483648, %v3008_v31 }
 0x1e9   : > { %v1053_v43 = vsel %vm1051_vm6, %v1052_v34, %v3008_v31  ;;  %v947_v46 = vmul.f32 %v3010_v39, %v3589_v9  ;;  %v1264_v52 = vsel %vm1262_vm11, %v1052_v34, %v3008_v31  ;;  %vm1362_vm6 = vcmp.lt.s32.totalorder %v1361_v53, 2 }
 0x1ea   : > { %v1050_v30 = vsel %vm1048_vm7, %v3006_v29, %v1049_v40  ;;  %v1261_v50 = vsel %vm1259_vm10, %v3006_v29, %v1049_v40  ;;  %vm1148_vm7 = vweird.f32 %v3521_v37 }
 0x1eb   : > { %v1054_v48 = vsel %vm1047_vm9, %v1050_v30, %v1053_v43  ;;  %v1265_v38 = vsel %vm1258_vm14, %v1261_v50, %v1264_v52  ;;  %v949_v59 = vsel %vm948_vm15, %v3589_v9, %v947_v46 }
 0x1ec   : > { %v1055_v36 = vsel %vm1045_vm13, nan, %v1054_v48  ;;  %v1266_v54 = vsel %vm1045_vm13, nan, %v1265_v38  ;;  %v952_v60 = vsel %vm950_vm0, %v951_v61, %v949_v59 }
 0x1ed   : > { %v1159_v51 = vmul.f32 %v1055_v36, %v945_v55  ;;  %v1371_v10 = vmul.f32 %v1266_v54, %v945_v55 }
 0x1ef   : > { %v3012_v57 = vpop.eup %3011  ;;  %v1161_v8 = vpack.c.bf16 %v1159_v51, %v1159_v51 }
 0x1f0   : > { %v3014_v63 = vpop.eup %3013  ;;  %v1155_v0 = vxor.u32 2147483648, %v3012_v57 }
 0x1f1   : > { %v1152_v1 = vxor.u32 2147483648, %v3014_v63  ;;  %v1390_v20 = vsub.bf16 0, %v1161_v8 }
 0x1f2   : > { %v1156_v56 = vsel %vm1154_vm1, %v1155_v0, %v3014_v63  ;;  %v1368_v58 = vsel %vm1366_vm2, %v1155_v0, %v3014_v63 }
 0x1f3   : > { %v1153_v2 = vsel %vm1151_vm3, %v3012_v57, %v1152_v1  ;;  %v1365_v3 = vsel %vm1363_vm4, %v3012_v57, %v1152_v1 }
 0x1f4   : > { %v1157_v62 = vsel %vm1150_vm5, %v1153_v2, %v1156_v56  ;;  %v1369_v11 = vsel %vm1362_vm6, %v1365_v3, %v1368_v58 }
 0x1f5   : > { %v1158_v13 = vsel %vm1148_vm7, nan, %v1157_v62  ;;  %v1370_v35 = vsel %vm1148_vm7, nan, %v1369_v11 }
 0x1f6   : > { %v1160_v14 = vmul.f32 %v1158_v13, %v952_v60  ;;  %v1372_v18 = vmul.f32 %v1370_v35, %v952_v60 }
 0x1f8   : > { %v1162_v33 = vpack.c.bf16 %v1160_v14, %v1160_v14  ;;  %v2800_v12 = vpack.c.bf16 %v1160_v14, %v1159_v51  ;;  %v2801_v19 = vpack.c.bf16 %v1372_v18, %v1371_v10 }
 0x1fa   : > { %1381 = vst [vmem:[#allocation2] sm:$0xff] %v2800_v12  ;;  %1388 = vst [vmem:[#allocation2 + $0x8] sm:$0xff] %v2801_v19  ;;  %v1391_v37 = vsub.bf16 0, %v1162_v33 }
 0x1fb   : > { %1389 = vst [vmem:[#allocation3 + $0x8] sm:$0xff] %v2801_v19 }
 0x1fc   : > { %v2654_v9 = vcombine.low %v1390_v20, %v1391_v37 }
 0x1fe   : > { %1398 = vst [vmem:[#allocation3] sm:$0xff] %v2654_v9 }
 0x1ff PF: > { %s1399_s19 = sld [smem:[#allocation5]] }
 0x205   : > { %p2655_p2 = scmp.ne.s32.totalorder %s1399_s19, 0 }
 0x207   : > { %1403 = sbr.rel (%p2655_p2) target bundleno = 531 (0x213), region = 60 }
 0x20c   : > { %v2802_v21 = vpack.c.bf16 %v3447_v6, %v3443_v4  ;;  %v2803_v22 = vpack.c.bf16 %v3449_v7, %v3445_v5  ;;  %v1404_v23 = vpack.c.bf16 %v3443_v4, %v3443_v4  ;;  %v1405_v24 = vpack.c.bf16 %v3447_v6, %v3447_v6 }
 0x20e   : > { %1414 = vst [vmem:[#allocation2] sm:$0xff] %v2802_v21  ;;  %1421 = vst [vmem:[#allocation2 + $0x8] sm:$0xff] %v2803_v22  ;;  %v1423_v15 = vsub.bf16 0, %v1404_v23  ;;  %v1424_v16 = vsub.bf16 0, %v1405_v24 }
 0x20f   : > { %1422 = vst [vmem:[#allocation3 + $0x8] sm:$0xff] %v2803_v22 }
 0x210   : > { %v2658_v25 = vcombine.low %v1423_v15, %v1424_v16 }
 0x212   : > { %1431 = vst [vmem:[#allocation3] sm:$0xff] %v2658_v25 }
 0x213 PF: > { %v3644_v26 = vld [vmem:[#allocation10 + $0x74] ss:$8 sps:$4 sm:$0xff]   ;;  %v3649_v5 = vld [vmem:[#allocation10 + $0x70] ss:$8 sps:$4 sm:$0xff]   ;;  %v3654_v6 = vld [vmem:[#allocation10 + $0x64] ss:$8 sps:$4 sm:$0xff]  }
 0x214   : > { %v3646_v17 = vld [vmem:[#allocation10 + $0x174] ss:$8 sps:$4 sm:$0xff]   ;;  %1834 = vmatprep.subr.bf16.mxu0 %v3644_v26  ;;  %v3651_v4 = vld [vmem:[#allocation10 + $0x170] ss:$8 sps:$4 sm:$0xff]   ;;  %v3658_v7 = vld [vmem:[#allocation10 + $0x164] ss:$8 sps:$4 sm:$0xff]  }
 0x215   : > { %1875 = vmatprep.subr.bf16.mxu1 %v3646_v17  ;;  %1835 = vmatpush1.bf16.msra.mxu0 %v3649_v5  ;;  %v3660_v27 = vld [vmem:[#allocation10 + $0x60] ss:$8 sps:$4 sm:$0xff]   ;;  %v3666_v29 = vld [vmem:[#allocation10 + $0x54] ss:$8 sps:$4 sm:$0xff]   ;;  %v3670_v31 = vld [vmem:[#allocation10 + $0x50] ss:$8 sps:$4 sm:$0xff]  }
 0x216   : > { %1876 = vmatpush1.bf16.msra.mxu1 %v3651_v4  ;;  %1836 = vmatprep.subr.bf16.mxu0 %v3654_v6  ;;  %v3663_v28 = vld [vmem:[#allocation10 + $0x160] ss:$8 sps:$4 sm:$0xff]   ;;  %v3668_v41 = vld [vmem:[#allocation10 + $0x154] ss:$8 sps:$4 sm:$0xff]   ;;  %v3672_v34 = vld [vmem:[#allocation10 + $0x150] ss:$8 sps:$4 sm:$0xff]  }
 0x217   : > { %1877 = vmatprep.subr.bf16.mxu1 %v3658_v7  ;;  %v3676_v39 = vld [vmem:[#allocation10 + $0x44] ss:$8 sps:$4 sm:$0xff]   ;;  %v3682_v40 = vld [vmem:[#allocation10 + $0x40] ss:$8 sps:$4 sm:$0xff]   ;;  %v3688_v43 = vld [vmem:[#allocation10 + $0x34] ss:$8 sps:$4 sm:$0xff]  }
 0x218   : > { %v3680_v32 = vld [vmem:[#allocation10 + $0x144] ss:$8 sps:$4 sm:$0xff]   ;;  %v3686_v42 = vld [vmem:[#allocation10 + $0x140] ss:$8 sps:$4 sm:$0xff]   ;;  %v3692_v44 = vld [vmem:[#allocation10 + $0x134] ss:$8 sps:$4 sm:$0xff]  }
 0x219   : > { %1837 = vmatpush1.bf16.msra.mxu0 %v3660_v27  ;;  %v3694_v30 = vld [vmem:[#allocation10 + $0x30] ss:$8 sps:$4 sm:$0xff]   ;;  %v3700_v46 = vld [vmem:[#allocation10 + $0x24] ss:$8 sps:$4 sm:$0xff]   ;;  %v3706_v48 = vld [vmem:[#allocation10 + $0x20] ss:$8 sps:$4 sm:$0xff]  }
 0x21a   : > { %1878 = vmatpush1.bf16.msra.mxu1 %v3663_v28  ;;  %1838 = vmatprep.subr.bf16.mxu0 %v3666_v29  ;;  %v3696_v45 = vld [vmem:[#allocation10 + $0x130] ss:$8 sps:$4 sm:$0xff]   ;;  %v3704_v47 = vld [vmem:[#allocation10 + $0x124] ss:$8 sps:$4 sm:$0xff]   ;;  %v3710_v49 = vld [vmem:[#allocation10 + $0x120] ss:$8 sps:$4 sm:$0xff]  }
 0x21b   : > { %1879 = vmatprep.subr.bf16.mxu1 %v3668_v41  ;;  %v3712_v50 = vld [vmem:[#allocation10 + $0x14] ss:$8 sps:$4 sm:$0xff]   ;;  %v3718_v53 = vld [vmem:[#allocation10 + $0x10] ss:$8 sps:$4 sm:$0xff]   ;;  %v3724_v36 = vld [vmem:[#allocation10 + $0x4] ss:$8 sps:$4 sm:$0xff]  }
 0x21c   : > { %v3716_v52 = vld [vmem:[#allocation10 + $0x114] ss:$8 sps:$4 sm:$0xff]   ;;  %v3720_v55 = vld [vmem:[#allocation10 + $0x110] ss:$8 sps:$4 sm:$0xff]   ;;  %v3728_v38 = vld [vmem:[#allocation10 + $0x104] ss:$8 sps:$4 sm:$0xff]  }
 0x21d   : > { %1839 = vmatpush1.bf16.msra.mxu0 %v3670_v31  ;;  %v3730_v57 = vld [vmem:[#allocation10] ss:$8 sps:$4 sm:$0xff]   ;;  %v3736_v61 = vld [vmem:[#allocation10 + $0xf4] ss:$8 sps:$4 sm:$0xff]   ;;  %v3742_v0 = vld [vmem:[#allocation10 + $0xf0] ss:$8 sps:$4 sm:$0xff]  }
 0x21e   : > { %1880 = vmatpush1.bf16.msra.mxu1 %v3672_v34  ;;  %1840 = vmatprep.subr.bf16.mxu0 %v3676_v39  ;;  %v3734_v59 = vld [vmem:[#allocation10 + $0x100] ss:$8 sps:$4 sm:$0xff]   ;;  %v3740_v63 = vld [vmem:[#allocation10 + $0x1f4] ss:$8 sps:$4 sm:$0xff]   ;;  %v3744_v51 = vld [vmem:[#allocation10 + $0x1f0] ss:$8 sps:$4 sm:$0xff]  }
 0x21f   : > { %1881 = vmatprep.subr.bf16.mxu1 %v3680_v32  ;;  %v3748_v1 = vld [vmem:[#allocation10 + $0xe4] ss:$8 sps:$4 sm:$0xff]   ;;  %v3754_v56 = vld [vmem:[#allocation10 + $0xe0] ss:$8 sps:$4 sm:$0xff]   ;;  %v3760_v60 = vld [vmem:[#allocation10 + $0xd4] ss:$8 sps:$4 sm:$0xff]  }
 0x220   : > { %v3752_v54 = vld [vmem:[#allocation10 + $0x1e4] ss:$8 sps:$4 sm:$0xff]   ;;  %v3758_v58 = vld [vmem:[#allocation10 + $0x1e0] ss:$8 sps:$4 sm:$0xff]   ;;  %v3764_v2 = vld [vmem:[#allocation10 + $0x1d4] ss:$8 sps:$4 sm:$0xff]  }
 0x221   : > { %1841 = vmatpush1.bf16.msra.mxu0 %v3682_v40  ;;  %v3766_v3 = vld [vmem:[#allocation10 + $0xd0] ss:$8 sps:$4 sm:$0xff]   ;;  %v3772_v8 = vld [vmem:[#allocation10 + $0xc4] ss:$8 sps:$4 sm:$0xff]   ;;  %v3780_v14 = vld [vmem:[#allocation10 + $0xc0] ss:$8 sps:$4 sm:$0xff]  }
 0x222   : > { %1882 = vmatpush1.bf16.msra.mxu1 %v3686_v42  ;;  %1842 = vmatprep.subr.bf16.mxu0 %v3688_v43  ;;  %v3768_v62 = vld [vmem:[#allocation10 + $0x1d0] ss:$8 sps:$4 sm:$0xff]   ;;  %v3776_v11 = vld [vmem:[#allocation10 + $0x1c4] ss:$8 sps:$4 sm:$0xff]   ;;  %v3782_v18 = vld [vmem:[#allocation10 + $0x1c0] ss:$8 sps:$4 sm:$0xff]  }
 0x223   : > { %1883 = vmatprep.subr.bf16.mxu1 %v3692_v44  ;;  %v1434_v10 = vld [vmem:[#allocation2] sm:$0xff]  ;;  %v1435_v35 = vld [vmem:[#allocation2 + $0x8] sm:$0xff]  ;;  %v3798_v9 = vld [vmem:[#allocation10 + $0xa4] ss:$8 sps:$4 sm:$0xff]  }
 0x224   : > { %v2660_v13 = vcombine.high %v1434_v10, %v1434_v10  ;;  %v2662_v33 = vcombine.high %v1435_v35, %v1435_v35  ;;  %v3786_v12 = vld [vmem:[#allocation10 + $0xb4] ss:$8 sps:$4 sm:$0xff]   ;;  %v3792_v20 = vld [vmem:[#allocation10 + $0xb0] ss:$8 sps:$4 sm:$0xff]   ;;  %3967 = vst [vmem:[#allocation13_spill] sm:$0xff] %v3798_v9 }
 0x225   : > { %1843 = vmatpush1.bf16.msra.mxu0 %v3694_v30  ;;  %v3788_v19 = vld [vmem:[#allocation10 + $0x1b4] ss:$8 sps:$4 sm:$0xff]   ;;  %v3794_v37 = vld [vmem:[#allocation10 + $0x1b0] ss:$8 sps:$4 sm:$0xff]   ;;  %v3800_v21 = vld [vmem:[#allocation10 + $0x1a4] ss:$8 sps:$4 sm:$0xff]  }
 0x226   : > { %1884 = vmatpush1.bf16.msra.mxu1 %v3696_v45  ;;  %1844 = vmatprep.subr.bf16.mxu0 %v3700_v46  ;;  %3968 = vst [vmem:[#allocation14_spill] sm:$0xff] %v3800_v21  ;;  %v3804_v22 = vld [vmem:[#allocation10 + $0xa0] ss:$8 sps:$4 sm:$0xff]   ;;  %v3810_v24 = vld [vmem:[#allocation10 + $0x94] ss:$8 sps:$4 sm:$0xff]  }
 0x227   : > { %1885 = vmatprep.subr.bf16.mxu1 %v3704_v47  ;;  %1866 = vmatprep.mubr.bf16.mxu0 %v2660_v13  ;;  %3969 = vst [vmem:[#allocation15_spill] sm:$0xff] %v3804_v22  ;;  %v3806_v23 = vld [vmem:[#allocation10 + $0x1a0] ss:$8 sps:$4 sm:$0xff]   ;;  %3971 = vst [vmem:[#allocation17_spill] sm:$0xff] %v3810_v24  ;;  %v3812_v15 = vld [vmem:[#allocation10 + $0x194] ss:$8 sps:$4 sm:$0xff]  }
 0x228   : > { %1907 = vmatprep.mubr.bf16.mxu1 %v2662_v33  ;;  %3970 = vst [vmem:[#allocation16_spill] sm:$0xff] %v3806_v23  ;;  %3972 = vst [vmem:[#allocation18_spill] sm:$0xff] %v3812_v15  ;;  %v3816_v16 = vld [vmem:[#allocation10 + $0x90] ss:$8 sps:$4 sm:$0xff]   ;;  %v3822_v13 = vld [vmem:[#allocation10 + $0x84] ss:$8 sps:$4 sm:$0xff]  }
 0x229   : > { %1845 = vmatpush1.bf16.msra.mxu0 %v3706_v48  ;;  %v3818_v25 = vld [vmem:[#allocation10 + $0x190] ss:$8 sps:$4 sm:$0xff]   ;;  %v3824_v33 = vld [vmem:[#allocation10 + $0x184] ss:$8 sps:$4 sm:$0xff]  }
 0x22a   : > { %1886 = vmatpush1.bf16.msra.mxu1 %v3710_v49  ;;  %1846 = vmatprep.subr.bf16.mxu0 %v3712_v50  ;;  %3973 = vst [vmem:[#allocation19_spill] sm:$0xff] %v3818_v25  ;;  %3974 = vst [vmem:[#allocation20_spill] sm:$0xff] %v3824_v33 }
 0x22b   : > { %1887 = vmatprep.subr.bf16.mxu1 %v3716_v52 }
 0x22d   : > { %1847 = vmatpush1.bf16.msra.mxu0 %v3718_v53 }
 0x22e   : > { %1888 = vmatpush1.bf16.msra.mxu1 %v3720_v55  ;;  %1848 = vmatprep.subr.bf16.mxu0 %v3724_v36 }
 0x22f   : > { %1889 = vmatprep.subr.bf16.mxu1 %v3728_v38 }
 0x231   : > { %1849 = vmatpush1.bf16.msra.mxu0 %v3730_v57 }
 0x232   : > { %1890 = vmatpush1.bf16.msra.mxu1 %v3734_v59  ;;  %1850 = vmatprep.subr.bf16.mxu0 %v3736_v61 }
 0x233   : > { %1891 = vmatprep.subr.bf16.mxu1 %v3740_v63 }
 0x235   : > { %1851 = vmatpush2.bf16.msra.mxu0 %v3742_v0 }
 0x236   : > { %1892 = vmatpush2.bf16.msra.mxu1 %v3744_v51  ;;  %1852 = vmatprep.subr.bf16.mxu0 %v3748_v1 }
 0x237   : > { %1893 = vmatprep.subr.bf16.mxu1 %v3752_v54 }
 0x239   : > { %1853 = vmatpush2.bf16.msra.mxu0 %v3754_v56 }
 0x23a   : > { %1894 = vmatpush2.bf16.msra.mxu1 %v3758_v58  ;;  %1854 = vmatprep.subr.bf16.mxu0 %v3760_v60 }
 0x23b   : > { %1895 = vmatprep.subr.bf16.mxu1 %v3764_v2 }
 0x23d   : > { %1855 = vmatpush2.bf16.msra.mxu0 %v3766_v3 }
 0x23e   : > { %1896 = vmatpush2.bf16.msra.mxu1 %v3768_v62  ;;  %1856 = vmatprep.subr.bf16.mxu0 %v3772_v8 }
 0x23f   : > { %1897 = vmatprep.subr.bf16.mxu1 %v3776_v11 }
 0x241   : > { %1857 = vmatpush2.bf16.msra.mxu0 %v3780_v14 }
 0x242   : > { %1898 = vmatpush2.bf16.msra.mxu1 %v3782_v18  ;;  %1858 = vmatprep.subr.bf16.mxu0 %v3786_v12 }
 0x243   : > { %1899 = vmatprep.subr.bf16.mxu1 %v3788_v19 }
 0x245   : > { %1859 = vmatpush2.bf16.msra.mxu0 %v3792_v20 }
 0x246   : > { %1900 = vmatpush2.bf16.msra.mxu1 %v3794_v37  ;;  %1860 = vmatprep.subr.bf16.mxu0 %v3798_v9  ;;  %v3834_v9 = vld [vmem:[#allocation3 + $0x8] sm:$0xff] }
 0x247   : > { %1901 = vmatprep.subr.bf16.mxu1 %v3800_v21  ;;  %v3828_v21 = vld [vmem:[#allocation10 + $0x80] ss:$8 sps:$4 sm:$0xff]  }
 0x249   : > { %1861 = vmatpush2.bf16.msra.mxu0 %v3804_v22  ;;  %v3830_v22 = vld [vmem:[#allocation10 + $0x180] ss:$8 sps:$4 sm:$0xff]  }
 0x24a   : > { %1902 = vmatpush2.bf16.msra.mxu1 %v3806_v23  ;;  %1862 = vmatprep.subr.bf16.mxu0 %v3810_v24  ;;  %v2659_v23 = vcombine.low %v1434_v10, %v1434_v10  ;;  %v2661_v24 = vcombine.low %v1435_v35, %v1435_v35 }
 0x24b   : > { %1903 = vmatprep.subr.bf16.mxu1 %v3812_v15  ;;  %v3836_v15 = vld [vmem:[#allocation3] sm:$0xff] }
 0x24d   : > { %1863 = vmatpush2.bf16.msra.mxu0 %v3816_v16 }
 0x24e   : > { %1904 = vmatpush2.bf16.msra.mxu1 %v3818_v25  ;;  %1864 = vmatprep.subr.bf16.mxu0 %v3822_v13  ;;  %v2728_v25 = vcombine.high %v3834_v9, %v3834_v9 }
 0x24f   : > { %1905 = vmatprep.subr.bf16.mxu1 %v3824_v33  ;;  %v2730_v33 = vcombine.high %v3836_v15, %v3836_v15 }
 0x251   : > { %1865 = vmatpush2.bf16.msra.mxu0 %v3828_v21 }
 0x252   : > { %1906 = vmatpush2.bf16.msra.mxu1 %v3830_v22  ;;  %2322 = vmatprep.subr.bf16.mxu0 %v3644_v26  ;;  %v3975_v26 = vld [vmem:[#allocation13_spill] sm:$0xff] }
 0x253   : > { %2363 = vmatprep.subr.bf16.mxu1 %v3646_v17  ;;  %v3976_v17 = vld [vmem:[#allocation14_spill] sm:$0xff] }
 0x254   : > { %1867 = vmatmul.mubr.bf16.vlgmr.msra.gmra.mxu0 %v2659_v23 }
 0x255   : > { %1908 = vmatmul.mubr.bf16.vlgmr.msra.gmra.mxu1 %v2661_v24  ;;  %2323 = vmatpush1.bf16.msra.mxu0 %v3649_v5  ;;  %v3977_v5 = vld [vmem:[#allocation15_spill] sm:$0xff] }
 0x256   : > { %2364 = vmatpush1.bf16.msra.mxu1 %v3651_v4  ;;  %2324 = vmatprep.subr.bf16.mxu0 %v3654_v6  ;;  %v3978_v4 = vld [vmem:[#allocation16_spill] sm:$0xff]  ;;  %v3979_v6 = vld [vmem:[#allocation17_spill] sm:$0xff] }
 0x257   : > { %2365 = vmatprep.subr.bf16.mxu1 %v3658_v7  ;;  %2354 = vmatprep.mubr.bf16.mxu0 %v2728_v25  ;;  %v3980_v7 = vld [vmem:[#allocation18_spill] sm:$0xff] }
 0x258   : > { %2395 = vmatprep.mubr.bf16.mxu1 %v2730_v33 }
 0x259   : > { %2325 = vmatpush1.bf16.msra.mxu0 %v3660_v27  ;;  %v3981_v27 = vld [vmem:[#allocation19_spill] sm:$0xff] }
 0x25a   : > { %2366 = vmatpush1.bf16.msra.mxu1 %v3663_v28  ;;  %2326 = vmatprep.subr.bf16.mxu0 %v3666_v29  ;;  %v3982_v28 = vld [vmem:[#allocation20_spill] sm:$0xff]  ;;  %v2727_v29 = vcombine.low %v3834_v9, %v3834_v9 }
 0x25b   : > { %2367 = vmatprep.subr.bf16.mxu1 %v3668_v41  ;;  %v2729_v41 = vcombine.low %v3836_v15, %v3836_v15 }
 0x25d   : > { %2327 = vmatpush1.bf16.msra.mxu0 %v3670_v31 }
 0x25e   : > { %2368 = vmatpush1.bf16.msra.mxu1 %v3672_v34  ;;  %2328 = vmatprep.subr.bf16.mxu0 %v3676_v39  ;;  %v1432_v34 = vld [vmem:[%s3430_s16] sm:$0xff] }
 0x25f   : > { %2369 = vmatprep.subr.bf16.mxu1 %v3680_v32 }
 0x261   : > { %2329 = vmatpush1.bf16.msra.mxu0 %v3682_v40 }
 0x262   : > { %2370 = vmatpush1.bf16.msra.mxu1 %v3686_v42  ;;  %2330 = vmatprep.subr.bf16.mxu0 %v3688_v43  ;;  %v1433_v42 = vld [vmem:[%s3430_s16 + $0x8] sm:$0xff] }
 0x263   : > { %2371 = vmatprep.subr.bf16.mxu1 %v3692_v44 }
 0x265   : > { %2331 = vmatpush1.bf16.msra.mxu0 %v3694_v30 }
 0x266   : > { %2372 = vmatpush1.bf16.msra.mxu1 %v3696_v45  ;;  %2332 = vmatprep.subr.bf16.mxu0 %v3700_v46 }
 0x267   : > { %2373 = vmatprep.subr.bf16.mxu1 %v3704_v47 }
 0x269   : > { %2333 = vmatpush1.bf16.msra.mxu0 %v3706_v48 }
 0x26a   : > { %2374 = vmatpush1.bf16.msra.mxu1 %v3710_v49  ;;  %2334 = vmatprep.subr.bf16.mxu0 %v3712_v50 }
 0x26b   : > { %2375 = vmatprep.subr.bf16.mxu1 %v3716_v52  ;;  %v1920_v52 = vld [vmem:[%s3435_s18] sm:$0xff] }
 0x26d   : > { %2335 = vmatpush1.bf16.msra.mxu0 %v3718_v53 }
 0x26e   : > { %2376 = vmatpush1.bf16.msra.mxu1 %v3720_v55  ;;  %2336 = vmatprep.subr.bf16.mxu0 %v3724_v36 }
 0x26f   : > { %2377 = vmatprep.subr.bf16.mxu1 %v3728_v38  ;;  %v1921_v38 = vld [vmem:[%s3435_s18 + $0x8] sm:$0xff] }
 0x271   : > { %2337 = vmatpush1.bf16.msra.mxu0 %v3730_v57 }
 0x272   : > { %2378 = vmatpush1.bf16.msra.mxu1 %v3734_v59  ;;  %2338 = vmatprep.subr.bf16.mxu0 %v3736_v61 }
 0x273   : > { %2379 = vmatprep.subr.bf16.mxu1 %v3740_v63 }
 0x275   : > { %2339 = vmatpush2.bf16.msra.mxu0 %v3742_v0 }
 0x276   : > { %2380 = vmatpush2.bf16.msra.mxu1 %v3744_v51  ;;  %2340 = vmatprep.subr.bf16.mxu0 %v3748_v1 }
 0x277   : > { %2381 = vmatprep.subr.bf16.mxu1 %v3752_v54 }
 0x279   : > { %2341 = vmatpush2.bf16.msra.mxu0 %v3754_v56 }
 0x27a   : > { %2382 = vmatpush2.bf16.msra.mxu1 %v3758_v58  ;;  %2342 = vmatprep.subr.bf16.mxu0 %v3760_v60 }
 0x27b   : > { %2383 = vmatprep.subr.bf16.mxu1 %v3764_v2 }
 0x27d   : > { %2343 = vmatpush2.bf16.msra.mxu0 %v3766_v3 }
 0x27e   : > { %2384 = vmatpush2.bf16.msra.mxu1 %v3768_v62  ;;  %2344 = vmatprep.subr.bf16.mxu0 %v3772_v8 }
 0x27f   : > { %2385 = vmatprep.subr.bf16.mxu1 %v3776_v11 }
 0x281   : > { %2345 = vmatpush2.bf16.msra.mxu0 %v3780_v14 }
 0x282   : > { %2386 = vmatpush2.bf16.msra.mxu1 %v3782_v18  ;;  %2346 = vmatprep.subr.bf16.mxu0 %v3786_v12 }
 0x283   : > { %2387 = vmatprep.subr.bf16.mxu1 %v3788_v19 }
 0x285   : > { %2347 = vmatpush2.bf16.msra.mxu0 %v3792_v20 }
 0x286   : > { %2388 = vmatpush2.bf16.msra.mxu1 %v3794_v37  ;;  %2348 = vmatprep.subr.bf16.mxu0 %v3975_v26 }
 0x287   : > { %2389 = vmatprep.subr.bf16.mxu1 %v3976_v17 }
 0x289   : > { %2349 = vmatpush2.bf16.msra.mxu0 %v3977_v5 }
 0x28a   : > { %2390 = vmatpush2.bf16.msra.mxu1 %v3978_v4  ;;  %2350 = vmatprep.subr.bf16.mxu0 %v3979_v6 }
 0x28b   : > { %2391 = vmatprep.subr.bf16.mxu1 %v3980_v7 }
 0x28d   : > { %2351 = vmatpush2.bf16.msra.mxu0 %v3816_v16 }
 0x28e   : > { %2392 = vmatpush2.bf16.msra.mxu1 %v3981_v27  ;;  %2352 = vmatprep.subr.bf16.mxu0 %v3822_v13 }
 0x28f   : > { %2393 = vmatprep.subr.bf16.mxu1 %v3982_v28 }
 0x291   : > { %2353 = vmatpush2.bf16.msra.mxu0 %v3828_v21 }
 0x292   : > { %2394 = vmatpush2.bf16.msra.mxu1 %v3830_v22 }
 0x294   : > { %2355 = vmatmul.mubr.bf16.vlgmr.msra.gmra.mxu0 %v2727_v29 }
 0x295   : > { %2396 = vmatmul.mubr.bf16.vlgmr.msra.gmra.mxu1 %v2729_v41 }
 0x314   : > { %v1868_v31 = vpop.f32.mrf.mxu0 }
 0x315   : > { %v1909_v39 = vpop.f32.mrf.mxu1 }
 0x316   : > { %v1910_v32 = vadd.f32 %v1909_v39, %v1868_v31  ;;  %v1870_v40 = vpop.f32.mrf.mxu0 }
 0x317   : > { %v1911_v43 = vpop.f32.mrf.mxu1 }
 0x318   : > { %v1916_v44 = vadd.f32 %v1910_v32, %v1432_v34  ;;  %v1912_v30 = vadd.f32 %v1911_v43, %v1870_v40  ;;  %v1872_v45 = vpop.f32.mrf.mxu0 }
 0x319   : > { %v1913_v46 = vpop.f32.mrf.mxu1 }
 0x31a   : > { %1918 = vst [vmem:[%s3430_s16] sm:$0xff] %v1916_v44  ;;  %v1917_v47 = vadd.f32 %v1912_v30, %v1433_v42  ;;  %v1873_v48 = vpop.f32.mrf.mxu0 }
 0x31b   : > { %v1914_v49 = vpop.f32.mrf.mxu1 }
 0x31c   : > { %1919 = vst [vmem:[%s3430_s16 + $0x8] sm:$0xff] %v1917_v47 }
 0x354   : > { %v2356_v50 = vpop.f32.mrf.mxu0 }
 0x355   : > { %v2397_v53 = vpop.f32.mrf.mxu1 }
 0x356   : > { %v2398_v55 = vadd.f32 %v2397_v53, %v2356_v50  ;;  %v2358_v36 = vpop.f32.mrf.mxu0 }
 0x357   : > { %v2399_v57 = vpop.f32.mrf.mxu1 }
 0x358   : > { %v2404_v59 = vadd.f32 %v2398_v55, %v1920_v52  ;;  %v2400_v61 = vadd.f32 %v2399_v57, %v2358_v36  ;;  %v2360_v63 = vpop.f32.mrf.mxu0 }
 0x359   : > { %v2401_v0 = vpop.f32.mrf.mxu1 }
 0x35a   : > { %2406 = vst [vmem:[%s3435_s18] sm:$0xff] %v2404_v59  ;;  %v2405_v51 = vadd.f32 %v2400_v61, %v1921_v38  ;;  %v2361_v1 = vpop.f32.mrf.mxu0 }
 0x35b   : > { %v2402_v54 = vpop.f32.mrf.mxu1 }
 0x35c   : > { %2407 = vst [vmem:[%s3435_s18 + $0x8] sm:$0xff] %v2405_v51 }
 0x35d PF: > { %s22_s28 = sadd.s32 1, %s3253_s28   ;;  %s3983_s20 = smov %s3990_s23 }
 0x35e   : > { %p19_p3 = scmp.ge.s32.totalorder %s22_s28, 4   ;;  %s3984_s23 = smov %s3237_s24 }
 0x35f   : > { %s3985_s24 = smov %s3241_s25  ;;  %s3986_s25 = smov %s3394_s13 }
 0x360   : > { %s3987_s26 = smov %s3249_s27  ;;  %s3988_s27 = smov %s3983_s20 }
 0x361   :  { %21 = sbr.rel (!%p19_p3) target bundleno = 7 (0x7), region = 113 }
 0x366   :  { %2445 = vsyncpa [#allocation7], 1 }
 0x367   :  { %2447 = vsyncpa [#allocation7 + $0x1], 1 }
 0x368   :  { %2448 = vsyncpa [#allocation9], 1 }

</bundles_post_ra>
